<compile_context>
chip_gen: v5e
topology: v5e:2x2
jax: 0.10.0
libtpu: 0.0.40
codegen_flags: <defaults>
</compile_context>

<pallas_src>
import jax
import jax.numpy as jnp
import numpy as np
from jax.experimental import pallas as pl
from jax.experimental.pallas import tpu as pltpu

# ---------------- static model configuration (small, synthetic) ----------------
WIN = 32                  # analysis window (samples)
HOP = 16                  # frame hop (samples)
N_FRAMES = 4              # frames produced per streaming chunk
N_SAMP = (N_FRAMES - 1) * HOP + WIN          # samples per chunk (80)
N_MELS = 16               # filterbank channels
N_CC = 9                  # frontend.dct.size(-1)
DROP_FIRST = True
FEAT = N_CC - 1 if DROP_FIRST else N_CC      # n_layer_1_feature_size (8)
N1_CTX = 6                # n_layer_1_context
H1 = 32                   # mlp_layer_1 out == n_layer_2_feature_size
N2_CTX = 4                # n_layer_2_context
HOP2 = 2                  # layer_2_frames_hop_size
N2_SEL = len(range(0, N2_CTX, HOP2))         # 2
H2 = 32                   # mlp_layer_2 hidden
N_OUT = 1                 # mlp_out output

# PCEN constants (streaming per-channel energy normalization)
PCEN_S = 0.04
PCEN_EPS = 1e-6
PCEN_ALPHA = 0.98
PCEN_DELTA = 2.0
PCEN_R = 0.5
SQRT_DELTA = PCEN_DELTA ** PCEN_R

# ---------------- packed parameter slab layout (rows x 64 lanes) ----------------
LANES = 64
NFM = N_FRAMES * N_MELS       # 64  flat frontend width (frame-major)
NFF = N_FRAMES * FEAT         # 32  flat new-feature width per chunk
CHUNKS_PER_STEP = 8           # K streaming chunks per grid step

UFB_OFF = 0                       # (N_SAMP, 64)  framing + filterbank, unfolded
IIRM_OFF = UFB_OFF + N_SAMP       # (16, 64)      PCEN smoother: m_prev contribution
IIRE_OFF = IIRM_OFF + N_MELS      # (64, 64)      PCEN smoother: energy contribution
DCT_OFF = IIRE_OFF + NFM          # (64, 64)      block-diag DCT, drop_first baked in
W1A_OFF = DCT_OFF + NFM           # (64, 64)      mlp_layer_1 rows hit by PREVIOUS chunk feats
W1B_OFF = W1A_OFF + NFM           # (64, 64)      mlp_layer_1 rows hit by CURRENT chunk feats
W2A_OFF = W1B_OFF + NFM           # (64, 64)      mlp_layer_2 rows hit by h1 from 3 chunks ago
W2B_OFF = W2A_OFF + NFM           # (64, 64)      mlp_layer_2 rows hit by h1 from prev chunk
BIAS_OFF = W2B_OFF + NFM          # (8, 64): rows = b1, b2, wo, [bo, 0, ...]
PARAM_ROWS = BIAS_OFF + 8         # 488 (all block offsets are multiples of 8)


# ------------------------------- Pallas kernel --------------------------------
def _model_kernel(x_ref, p_ref, s0_ref, out_ref, st_ref):
    step = pl.program_id(0)

    # step 0: load the carried streaming state into the resident state block
    @pl.when(step == 0)
    def _():
        st_ref[...] = s0_ref[...]

    # ---- batched frontend for all K chunks of this grid step ----
    x = x_ref[...]                                              # (K, N_SAMP)
    proj = jnp.dot(x, p_ref[UFB_OFF:UFB_OFF + N_SAMP, :],
                   preferred_element_type=jnp.float32)          # (K, NFM)
    energy = proj * proj
    e_iir = jnp.dot(energy, p_ref[IIRE_OFF:IIRE_OFF + NFM, :],
                    preferred_element_type=jnp.float32)         # (K, NFM)

    iirm = p_ref[IIRM_OFF:IIRM_OFF + N_MELS, :]
    dctb = p_ref[DCT_OFF:DCT_OFF + NFM, :]
    w1a = p_ref[W1A_OFF:W1A_OFF + NFM, :]
    w1b = p_ref[W1B_OFF:W1B_OFF + NFM, :]
    w2a = p_ref[W2A_OFF:W2A_OFF + NFM, :]
    w2b = p_ref[W2B_OFF:W2B_OFF + NFM, :]
    bias = p_ref[BIAS_OFF:BIAS_OFF + 8, :]
    b1, b2, wo = bias[0:1, :], bias[1:2, :], bias[2:3, :]
    bo = bias[3:4, 0:1]

    # ---- carried streaming state (resident output block, constant index) ----
    m_prev = st_ref[0:1, 0:N_MELS]        # PCEN smoother of the last frame
    f_p = st_ref[1:2, 0:NFM]              # feats of the previous chunk (flat)
    f_pp = st_ref[2:3, 0:NFM]             # feats of the chunk before that
    h_m1 = st_ref[3:4, 0:NFM]             # h1 of previous chunk
    h_m2 = st_ref[4:5, 0:NFM]
    h_m3 = st_ref[5:6, 0:NFM]
    h_m4 = st_ref[6:7, 0:NFM]

    logits = []
    for k in range(CHUNKS_PER_STEP):      # static unroll: serial per-chunk chain
        # PCEN smoother states of the 4 frames: split accumulating matmuls,
        # the energy part was batched above.
        m_all = (jnp.dot(m_prev, iirm, preferred_element_type=jnp.float32)
                 + e_iir[k:k + 1, :])
        m_all = jnp.maximum(m_all, 0.0)                         # guard the log
        inv_den = jnp.exp(-PCEN_ALPHA * jnp.log(PCEN_EPS + m_all))
        pcen = jnp.sqrt(energy[k:k + 1, :] * inv_den + PCEN_DELTA) - SQRT_DELTA
        feats = jnp.dot(pcen, dctb, preferred_element_type=jnp.float32)  # (1,64)

        # mlp_layer_1: context FIFO folded into two matmuls (prev + cur feats)
        h1 = jnp.maximum(
            jnp.dot(f_p, w1a, preferred_element_type=jnp.float32)
            + jnp.dot(feats, w1b, preferred_element_type=jnp.float32) + b1, 0.0)

        # mlp_layer_2: hop-2 selection = h1 from 3 chunks ago + previous chunk
        h2 = jnp.maximum(
            jnp.dot(h_m3, w2a, preferred_element_type=jnp.float32)
            + jnp.dot(h_m1, w2b, preferred_element_type=jnp.float32) + b2, 0.0)

        # mlp_out (N_OUT == 1): lane reduction; sigmoid is deferred + batched
        logits.append(jnp.sum(h2 * wo, axis=-1, keepdims=True))

        # FIFO shifts are just Python variable renames (no data movement)
        m_prev = m_all[:, (N_FRAMES - 1) * N_MELS:]
        f_pp, f_p = f_p, feats
        h_m4, h_m3, h_m2, h_m1 = h_m3, h_m2, h_m1, h1

    # lane-dense output row for this step: K logits + zero padding to 128 lanes
    row = jax.nn.sigmoid(jnp.concatenate(logits, axis=1) + bo)      # (1, K)
    row = jnp.concatenate(
        [row, jnp.zeros((1, 128 - CHUNKS_PER_STEP), jnp.float32)], axis=1)
    out_ref[pl.ds(step, 1), :] = row

    # write the carried state once per K chunks (HBM writeback only at the end)
    st_ref[0:1, 0:N_MELS] = m_prev
    st_ref[1:2, 0:NFM] = f_p
    st_ref[2:3, 0:NFM] = f_pp
    st_ref[3:4, 0:NFM] = h_m1
    st_ref[4:5, 0:NFM] = h_m2
    st_ref[5:6, 0:NFM] = h_m3
    st_ref[6:7, 0:NFM] = h_m4


def _pallas_forward(x2, param_slab, state0):
    T = x2.shape[0]
    n_steps = T // CHUNKS_PER_STEP
    flops_per_chunk = 2 * LANES * (N_SAMP + NFM + N_MELS + NFM + 2 * NFM + 2 * NFM)
    cost = pl.CostEstimate(
        flops=T * flops_per_chunk,
        transcendentals=T * (3 * NFM + 4),
        bytes_accessed=4 * (PARAM_ROWS * LANES + 2 * 8 * 128
                            + T * N_SAMP + n_steps * 128),
    )
    grid_spec = pltpu.PrefetchScalarGridSpec(
        num_scalar_prefetch=0,
        grid=(n_steps,),
        in_specs=[
            pl.BlockSpec((CHUNKS_PER_STEP, N_SAMP), lambda t: (t, 0)),  # K chunks / step
            pl.BlockSpec((PARAM_ROWS, LANES), lambda t: (0, 0)),        # weights (resident)
            pl.BlockSpec((8, 128), lambda t: (0, 0)),                   # init state (resident)
        ],
        out_specs=(
            pl.BlockSpec((n_steps, 128), lambda t: (0, 0)),   # all outputs (resident)
            pl.BlockSpec((8, 128), lambda t: (0, 0)),         # final state (resident)
        ),
    )
    return pl.pallas_call(
        _model_kernel,
        out_shape=(
            jax.ShapeDtypeStruct((n_steps, 128), jnp.float32),
            jax.ShapeDtypeStruct((8, 128), jnp.float32),
        ),
        grid_spec=grid_spec,
        compiler_params=pltpu.CompilerParams(
            dimension_semantics=("arbitrary",)),   # sequential streaming dependency
        cost_estimate=cost,
    )(x2, param_slab, state0)


# ------------------------- host-side parameter packing -------------------------
def pack_params(params):
    fb = np.asarray(params["fb"], np.float32)          # (WIN, N_MELS)
    dct = np.asarray(params["dct"], np.float32)        # (N_MELS, N_CC)
    w1 = np.asarray(params["w1"], np.float32)          # (N1_CTX*FEAT, H1) (in, out)
    b1 = np.asarray(params["b1"], np.float32).reshape(-1)
    w2 = np.asarray(params["w2"], np.float32)          # (N2_SEL*H1, H2)
    b2 = np.asarray(params["b2"], np.float32).reshape(-1)
    wo = np.asarray(params["wo"], np.float32).reshape(-1)   # (H2,)
    bo = np.asarray(params["bo"], np.float32).reshape(-1)   # (1,)

    decay = 1.0 - PCEN_S
    ch = np.arange(N_MELS)

    # framing + filterbank folded into one "unfold" matrix
    ufb = np.zeros((N_SAMP, NFM), np.float32)
    for t in range(N_FRAMES):
        ufb[t * HOP:t * HOP + WIN, t * N_MELS:(t + 1) * N_MELS] = fb

    # PCEN smoother split: m_t = decay^(t+1) m_prev + s*sum_j decay^(t-j) e_j
    iirm = np.zeros((N_MELS, NFM), np.float32)
    iire = np.zeros((NFM, NFM), np.float32)
    for t in range(N_FRAMES):
        iirm[ch, t * N_MELS + ch] = decay ** (t + 1)
        for j in range(t + 1):
            iire[j * N_MELS + ch, t * N_MELS + ch] = PCEN_S * decay ** (t - j)

    # block-diagonal DCT with the first cepstral coefficient dropped
    dct_d = dct[:, 1:] if DROP_FIRST else dct           # (N_MELS, FEAT)
    dctb = np.zeros((NFM, LANES), np.float32)
    for t in range(N_FRAMES):
        dctb[t * N_MELS:(t + 1) * N_MELS, t * FEAT:(t + 1) * FEAT] = dct_d

    # mlp_layer_1 split: ctx window = [prev frame2, prev frame3, cur frames 0..3]
    w1a = np.zeros((NFM, LANES), np.float32)
    w1b = np.zeros((NFM, LANES), np.float32)
    w1a[2 * FEAT:3 * FEAT, :H1] = w1[0 * FEAT:1 * FEAT, :]   # prev frame 2 -> slot 0
    w1a[3 * FEAT:4 * FEAT, :H1] = w1[1 * FEAT:2 * FEAT, :]   # prev frame 3 -> slot 1
    for i in range(N_FRAMES):                                # cur frame i -> slot 2+i
        w1b[i * FEAT:(i + 1) * FEAT, :H1] = w1[(2 + i) * FEAT:(3 + i) * FEAT, :]

    # mlp_layer_2 split (hop-2 selection: window slots 0 and 2)
    w2a = np.zeros((NFM, LANES), np.float32)
    w2b = np.zeros((NFM, LANES), np.float32)
    w2a[:H1, :H2] = w2[:H1, :]               # slot 0 == h1 from 3 chunks ago
    w2b[:H1, :H2] = w2[H1:2 * H1, :]         # slot 2 == h1 from previous chunk

    bias = np.zeros((8, LANES), np.float32)
    bias[0, :H1] = b1
    bias[1, :H2] = b2
    bias[2, :H2] = wo
    bias[3, 0] = bo[0]

    slab = np.concatenate([ufb, iirm, iire, dctb, w1a, w1b, w2a, w2b, bias], axis=0)
    assert slab.shape == (PARAM_ROWS, LANES)
    return jnp.asarray(slab)


# ------------------------------ wrapper (glue) ---------------------------------
def dnn_dnn_spcen_cc_forward(x_chunks, param_slab, m_last_frame=None,
                             layer_1_context=None, layer_2_context=None):
    """Runs T sequential streaming forward passes of the model in ONE kernel.

    x_chunks: (T, N_SAMP) float32, T a multiple of CHUNKS_PER_STEP.
    Returns (out (T,), m_last_frame (1,N_MELS), layer_1_context (N1_CTX,FEAT),
             layer_2_context (N2_CTX,H1)), exactly as T calls of the PyTorch
    forward would give.
    """
    x_chunks = jnp.asarray(x_chunks, jnp.float32)
    T = x_chunks.shape[0]
    assert T % CHUNKS_PER_STEP == 0, "T must be a multiple of CHUNKS_PER_STEP"
    if m_last_frame is None:
        m_last_frame = jnp.zeros((1, N_MELS), jnp.float32)
    if layer_1_context is None:
        layer_1_context = jnp.zeros((N1_CTX, FEAT), jnp.float32)
    if layer_2_context is None:
        layer_2_context = jnp.zeros((N2_CTX, H1), jnp.float32)

    # pack the carried state: row0=m, row1=feats_prev, row2=feats_prevprev,
    # rows3..6 = h1 history (most recent first)
    state0 = jnp.zeros((8, 128), jnp.float32)
    state0 = state0.at[0, :N_MELS].set(m_last_frame.reshape(-1))
    state0 = state0.at[1, :NFF].set(layer_1_context[N1_CTX - N_FRAMES:].reshape(-1))
    state0 = state0.at[2, 2 * FEAT:4 * FEAT].set(
        layer_1_context[:N1_CTX - N_FRAMES].reshape(-1))
    state0 = state0.at[3, :H1].set(layer_2_context[3])
    state0 = state0.at[4, :H1].set(layer_2_context[2])
    state0 = state0.at[5, :H1].set(layer_2_context[1])
    state0 = state0.at[6, :H1].set(layer_2_context[0])

    out_rows, st = _pallas_forward(x_chunks, param_slab, state0)
    out = out_rows[:, :CHUNKS_PER_STEP].reshape(T)
    m_new = st[0:1, :N_MELS]
    l1 = jnp.concatenate([st[2, 2 * FEAT:4 * FEAT].reshape(2, FEAT),
                          st[1, :NFF].reshape(N_FRAMES, FEAT)], axis=0)
    l2 = jnp.stack([st[6, :H1], st[5, :H1], st[4, :H1], st[3, :H1]], axis=0)
    return out, m_new, l1, l2


def init_params(key):
    ks = jax.random.split(key, 7)
    fb = jax.random.normal(ks[0], (WIN, N_MELS), jnp.float32) / jnp.sqrt(float(WIN))
    n = jnp.arange(N_MELS, dtype=jnp.float32)[:, None]
    k = jnp.arange(N_CC, dtype=jnp.float32)[None, :]
    dct = jnp.cos(jnp.pi * (n + 0.5) * k / N_MELS) * jnp.sqrt(2.0 / N_MELS)
    w1 = jax.random.normal(ks[1], (N1_CTX * FEAT, H1), jnp.float32) / jnp.sqrt(float(N1_CTX * FEAT))
    b1 = jax.random.normal(ks[2], (1, H1), jnp.float32) * 0.01
    w2 = jax.random.normal(ks[3], (N2_SEL * H1, H2), jnp.float32) / jnp.sqrt(float(N2_SEL * H1))
    b2 = jax.random.normal(ks[4], (1, H2), jnp.float32) * 0.01
    wo = jax.random.normal(ks[5], (N_OUT, H2), jnp.float32) / jnp.sqrt(float(H2))  # torch (out, in)
    bo = jax.random.normal(ks[6], (1, N_OUT), jnp.float32) * 0.01
    return dict(fb=fb, dct=dct, w1=w1, b1=b1, w2=w2, b2=b2, wo=wo, bo=bo)


# -------------------------- pure-JAX reference ----------------------------------
def reference_forward_chunk(x, p, m, l1_ctx, l2_ctx):
    x = x.reshape(-1)
    frames = jnp.stack([x[t * HOP:t * HOP + WIN] for t in range(N_FRAMES)], 0)
    energy = jnp.dot(frames, p["fb"], precision="highest") ** 2
    rows = []
    for t in range(N_FRAMES):
        e = energy[t:t + 1]
        m = (1.0 - PCEN_S) * m + PCEN_S * e
        rows.append((e / (PCEN_EPS + m) ** PCEN_ALPHA + PCEN_DELTA) ** PCEN_R
                    - PCEN_DELTA ** PCEN_R)
    pcen = jnp.concatenate(rows, 0)
    cc = jnp.dot(pcen, p["dct"], precision="highest")
    feats = cc[:, 1:] if DROP_FIRST else cc
    l1 = jnp.concatenate([l1_ctx, feats], 0)[-N1_CTX:]
    h1 = jax.nn.relu(jnp.dot(l1.reshape(1, -1), p["w1"], precision="highest") + p["b1"])
    l2 = jnp.concatenate([l2_ctx, h1], 0)[-N2_CTX:]
    h2 = jax.nn.relu(jnp.dot(l2[::HOP2].reshape(1, -1), p["w2"], precision="highest") + p["b2"])
    out = jax.nn.sigmoid(jnp.dot(h2, p["wo"].T, precision="highest") + p["bo"])
    return out.reshape(-1), m, l1, l2


if __name__ == "__main__":
    key = jax.random.PRNGKey(0)
    pkey, xkey = jax.random.split(key)
    params = init_params(pkey)
    slab = pack_params(params)

    T = 32                                       # 4 grid steps x 8 chunks per step
    x_chunks = jax.random.normal(xkey, (T, N_SAMP), jnp.float32)

    out, m, l1c, l2c = dnn_dnn_spcen_cc_forward(x_chunks, slab)
    jax.block_until_ready((out, m, l1c, l2c))

    # reference: T sequential single-chunk forwards (original PyTorch semantics)
    m_r = jnp.zeros((1, N_MELS), jnp.float32)
    l1_r = jnp.zeros((N1_CTX, FEAT), jnp.float32)
    l2_r = jnp.zeros((N2_CTX, H1), jnp.float32)
    outs_r = []
    for t in range(T):
        o, m_r, l1_r, l2_r = reference_forward_chunk(x_chunks[t], params, m_r, l1_r, l2_r)
        outs_r.append(o)
    outs_r = jnp.concatenate(outs_r)

    # loose tolerance: MXU default-precision vs XLA 'highest' matmul paths
    for got, want in [(out, outs_r), (m, m_r), (l1c, l1_r), (l2c, l2_r)]:
        assert jnp.allclose(got, want, rtol=5e-2, atol=5e-2), (got, want)

    print("KERNEL_OK")
</pallas_src>

<mosaic_0001>
module attributes {stable_mosaic.version = 11 : i64} {
  func.func @_model_kernel(%arg0: i32, %arg1: memref<8x80xf32, #tpu.memory_space<vmem>>, %arg2: memref<488x64xf32, #tpu.memory_space<vmem>>, %arg3: memref<8x128xf32, #tpu.memory_space<vmem>>, %arg4: memref<4x128xf32, #tpu.memory_space<vmem>>, %arg5: memref<8x128xf32, #tpu.memory_space<vmem>>) attributes {dimension_semantics = [#tpu.dimension_semantics<arbitrary>], iteration_bounds = array<i64: 4>, scalar_prefetch = 0 : i64, scratch_operands = 0 : i64, tpu.core_type = #tpu.core_type<tc>, window_params = [{transform_indices = @transform_0, window_bounds = array<i64: 8, 80>}, {pipeline_mode = #tpu.pipeline_mode<synchronous>, transform_indices = @transform_1, window_bounds = array<i64: 488, 64>}, {pipeline_mode = #tpu.pipeline_mode<synchronous>, transform_indices = @transform_2, window_bounds = array<i64: 8, 128>}, {pipeline_mode = #tpu.pipeline_mode<synchronous>, transform_indices = @transform_3, window_bounds = array<i64: 4, 128>}, {pipeline_mode = #tpu.pipeline_mode<synchronous>, transform_indices = @transform_4, window_bounds = array<i64: 8, 128>}]} {
    %c0_i32 = arith.constant 0 : i32
    %0 = arith.cmpi eq, %arg0, %c0_i32 : i32
    %1 = arith.extui %0 : i1 to i32
    %c0_i32_0 = arith.constant 0 : i32
    %2 = arith.cmpi ne, %1, %c0_i32_0 : i32
    scf.if %2 {
      %c0_146 = arith.constant 0 : index
      %c0_147 = arith.constant 0 : index
      %324 = vector.load %arg3[%c0_146, %c0_147] : memref<8x128xf32, #tpu.memory_space<vmem>>, vector<8x128xf32>
      %c0_148 = arith.constant 0 : index
      %c0_149 = arith.constant 0 : index
      %325 = vector.load %arg5[%c0_148, %c0_149] : memref<8x128xf32, #tpu.memory_space<vmem>>, vector<8x128xf32>
      tpu.vector_store %arg5[%c0_148, %c0_149], %324 {strides = array<i32>} : memref<8x128xf32, #tpu.memory_space<vmem>>, vector<8x128xf32>,
    } else {
    }
    %c0 = arith.constant 0 : index
    %c0_1 = arith.constant 0 : index
    %3 = vector.load %arg1[%c0, %c0_1] : memref<8x80xf32, #tpu.memory_space<vmem>>, vector<8x80xf32>
    %c0_2 = arith.constant 0 : index
    %c0_3 = arith.constant 0 : index
    %4 = vector.load %arg2[%c0_2, %c0_3] : memref<488x64xf32, #tpu.memory_space<vmem>>, vector<80x64xf32>
    %cst = arith.constant dense<0.000000e+00> : vector<8x64xf32>
    %5 = tpu.matmul %3, %4, %cst {dimension_numbers = #tpu.dot_dimension_numbers<[1], [0], [0], [1], [0, 0, 1, 1], [], []>} : vector<8x80xf32>, vector<80x64xf32>, vector<8x64xf32> -> vector<8x64xf32>
    %6 = arith.mulf %5, %5 : vector<8x64xf32>
    %c96 = arith.constant 96 : index
    %c0_4 = arith.constant 0 : index
    %7 = vector.load %arg2[%c96, %c0_4] : memref<488x64xf32, #tpu.memory_space<vmem>>, vector<64x64xf32>
    %cst_5 = arith.constant dense<0.000000e+00> : vector<8x64xf32>
    %8 = tpu.matmul %6, %7, %cst_5 {dimension_numbers = #tpu.dot_dimension_numbers<[1], [0], [0], [1], [0, 0, 1, 1], [], []>} : vector<8x64xf32>, vector<64x64xf32>, vector<8x64xf32> -> vector<8x64xf32>
    %c80 = arith.constant 80 : index
    %c0_6 = arith.constant 0 : index
    %9 = vector.load %arg2[%c80, %c0_6] : memref<488x64xf32, #tpu.memory_space<vmem>>, vector<16x64xf32>
    %c160 = arith.constant 160 : index
    %c0_7 = arith.constant 0 : index
    %10 = vector.load %arg2[%c160, %c0_7] : memref<488x64xf32, #tpu.memory_space<vmem>>, vector<64x64xf32>
    %c224 = arith.constant 224 : index
    %c0_8 = arith.constant 0 : index
    %11 = vector.load %arg2[%c224, %c0_8] : memref<488x64xf32, #tpu.memory_space<vmem>>, vector<64x64xf32>
    %c288 = arith.constant 288 : index
    %c0_9 = arith.constant 0 : index
    %12 = vector.load %arg2[%c288, %c0_9] : memref<488x64xf32, #tpu.memory_space<vmem>>, vector<64x64xf32>
    %c352 = arith.constant 352 : index
    %c0_10 = arith.constant 0 : index
    %13 = vector.load %arg2[%c352, %c0_10] : memref<488x64xf32, #tpu.memory_space<vmem>>, vector<64x64xf32>
    %c416 = arith.constant 416 : index
    %c0_11 = arith.constant 0 : index
    %14 = vector.load %arg2[%c416, %c0_11] : memref<488x64xf32, #tpu.memory_space<vmem>>, vector<64x64xf32>
    %c480 = arith.constant 480 : index
    %c0_12 = arith.constant 0 : index
    %15 = vector.load %arg2[%c480, %c0_12] : memref<488x64xf32, #tpu.memory_space<vmem>>, vector<8x64xf32>
    %16 = vector.extract_strided_slice %15 {offsets = [0, 0], sizes = [1, 64], strides = [1, 1]} : vector<8x64xf32> to vector<1x64xf32>
    %17 = vector.extract_strided_slice %15 {offsets = [1, 0], sizes = [1, 64], strides = [1, 1]} : vector<8x64xf32> to vector<1x64xf32>
    %18 = vector.extract_strided_slice %15 {offsets = [2, 0], sizes = [1, 64], strides = [1, 1]} : vector<8x64xf32> to vector<1x64xf32>
    %19 = vector.extract_strided_slice %15 {offsets = [3, 0], sizes = [1, 1], strides = [1, 1]} : vector<8x64xf32> to vector<1x1xf32>
    %c0_13 = arith.constant 0 : index
    %c0_14 = arith.constant 0 : index
    %20 = vector.load %arg5[%c0_13, %c0_14] : memref<8x128xf32, #tpu.memory_space<vmem>>, vector<1x16xf32>
    %c1 = arith.constant 1 : index
    %c0_15 = arith.constant 0 : index
    %21 = vector.load %arg5[%c1, %c0_15] : memref<8x128xf32, #tpu.memory_space<vmem>>, vector<1x64xf32>
    %c3 = arith.constant 3 : index
    %c0_16 = arith.constant 0 : index
    %22 = vector.load %arg5[%c3, %c0_16] : memref<8x128xf32, #tpu.memory_space<vmem>>, vector<1x64xf32>
    %c4 = arith.constant 4 : index
    %c0_17 = arith.constant 0 : index
    %23 = vector.load %arg5[%c4, %c0_17] : memref<8x128xf32, #tpu.memory_space<vmem>>, vector<1x64xf32>
    %c5 = arith.constant 5 : index
    %c0_18 = arith.constant 0 : index
    %24 = vector.load %arg5[%c5, %c0_18] : memref<8x128xf32, #tpu.memory_space<vmem>>, vector<1x64xf32>
    %cst_19 = arith.constant dense<0.000000e+00> : vector<1x64xf32>
    %25 = tpu.matmul %20, %9, %cst_19 {dimension_numbers = #tpu.dot_dimension_numbers<[1], [0], [0], [1], [0, 0, 1, 1], [], []>} : vector<1x16xf32>, vector<16x64xf32>, vector<1x64xf32> -> vector<1x64xf32>
    %26 = vector.extract_strided_slice %8 {offsets = [0, 0], sizes = [1, 64], strides = [1, 1]} : vector<8x64xf32> to vector<1x64xf32>
    %27 = arith.addf %25, %26 : vector<1x64xf32>
    %cst_20 = arith.constant 0.000000e+00 : f32
    %28 = vector.broadcast %cst_20 : f32 to vector<1x64xf32>
    %29 = arith.maximumf %27, %28 : vector<1x64xf32>
    %cst_21 = arith.constant 9.99999997E-7 : f32
    %30 = vector.broadcast %cst_21 : f32 to vector<1x64xf32>
    %31 = arith.addf %30, %29 : vector<1x64xf32>
    %32 = math.log %31 : vector<1x64xf32>
    %cst_22 = arith.constant -9.800000e-01 : f32
    %33 = vector.broadcast %cst_22 : f32 to vector<1x64xf32>
    %34 = arith.mulf %33, %32 : vector<1x64xf32>
    %35 = math.exp %34 : vector<1x64xf32>
    %36 = vector.extract_strided_slice %6 {offsets = [0, 0], sizes = [1, 64], strides = [1, 1]} : vector<8x64xf32> to vector<1x64xf32>
    %37 = arith.mulf %36, %35 : vector<1x64xf32>
    %cst_23 = arith.constant 2.000000e+00 : f32
    %38 = vector.broadcast %cst_23 : f32 to vector<1x64xf32>
    %39 = arith.addf %37, %38 : vector<1x64xf32>
    %40 = math.sqrt %39 : vector<1x64xf32>
    %cst_24 = arith.constant 1.41421354 : f32
    %41 = vector.broadcast %cst_24 : f32 to vector<1x64xf32>
    %42 = arith.subf %40, %41 : vector<1x64xf32>
    %cst_25 = arith.constant dense<0.000000e+00> : vector<1x64xf32>
    %43 = tpu.matmul %42, %10, %cst_25 {dimension_numbers = #tpu.dot_dimension_numbers<[1], [0], [0], [1], [0, 0, 1, 1], [], []>} : vector<1x64xf32>, vector<64x64xf32>, vector<1x64xf32> -> vector<1x64xf32>
    %cst_26 = arith.constant dense<0.000000e+00> : vector<1x64xf32>
    %44 = tpu.matmul %21, %11, %cst_26 {dimension_numbers = #tpu.dot_dimension_numbers<[1], [0], [0], [1], [0, 0, 1, 1], [], []>} : vector<1x64xf32>, vector<64x64xf32>, vector<1x64xf32> -> vector<1x64xf32>
    %cst_27 = arith.constant dense<0.000000e+00> : vector<1x64xf32>
    %45 = tpu.matmul %43, %12, %cst_27 {dimension_numbers = #tpu.dot_dimension_numbers<[1], [0], [0], [1], [0, 0, 1, 1], [], []>} : vector<1x64xf32>, vector<64x64xf32>, vector<1x64xf32> -> vector<1x64xf32>
    %46 = arith.addf %44, %45 : vector<1x64xf32>
    %47 = arith.addf %46, %16 : vector<1x64xf32>
    %cst_28 = arith.constant 0.000000e+00 : f32
    %48 = vector.broadcast %cst_28 : f32 to vector<1x64xf32>
    %49 = arith.maximumf %47, %48 : vector<1x64xf32>
    %cst_29 = arith.constant dense<0.000000e+00> : vector<1x64xf32>
    %50 = tpu.matmul %24, %13, %cst_29 {dimension_numbers = #tpu.dot_dimension_numbers<[1], [0], [0], [1], [0, 0, 1, 1], [], []>} : vector<1x64xf32>, vector<64x64xf32>, vector<1x64xf32> -> vector<1x64xf32>
    %cst_30 = arith.constant dense<0.000000e+00> : vector<1x64xf32>
    %51 = tpu.matmul %22, %14, %cst_30 {dimension_numbers = #tpu.dot_dimension_numbers<[1], [0], [0], [1], [0, 0, 1, 1], [], []>} : vector<1x64xf32>, vector<64x64xf32>, vector<1x64xf32> -> vector<1x64xf32>
    %52 = arith.addf %50, %51 : vector<1x64xf32>
    %53 = arith.addf %52, %17 : vector<1x64xf32>
    %cst_31 = arith.constant 0.000000e+00 : f32
    %54 = vector.broadcast %cst_31 : f32 to vector<1x64xf32>
    %55 = arith.maximumf %53, %54 : vector<1x64xf32>
    %56 = arith.mulf %55, %18 : vector<1x64xf32>
    %cst_32 = arith.constant dense<0.000000e+00> : vector<1xf32>
    %57 = vector.multi_reduction <add>, %56, %cst_32 [1] : vector<1x64xf32> to vector<1xf32>
    %58 = vector.shape_cast %57 : vector<1xf32> to vector<1x1xf32>
    %59 = vector.extract_strided_slice %29 {offsets = [0, 48], sizes = [1, 16], strides = [1, 1]} : vector<1x64xf32> to vector<1x16xf32>
    %cst_33 = arith.constant dense<0.000000e+00> : vector<1x64xf32>
    %60 = tpu.matmul %59, %9, %cst_33 {dimension_numbers = #tpu.dot_dimension_numbers<[1], [0], [0], [1], [0, 0, 1, 1], [], []>} : vector<1x16xf32>, vector<16x64xf32>, vector<1x64xf32> -> vector<1x64xf32>
    %61 = vector.extract_strided_slice %8 {offsets = [1, 0], sizes = [1, 64], strides = [1, 1]} : vector<8x64xf32> to vector<1x64xf32>
    %62 = arith.addf %60, %61 : vector<1x64xf32>
    %cst_34 = arith.constant 0.000000e+00 : f32
    %63 = vector.broadcast %cst_34 : f32 to vector<1x64xf32>
    %64 = arith.maximumf %62, %63 : vector<1x64xf32>
    %cst_35 = arith.constant 9.99999997E-7 : f32
    %65 = vector.broadcast %cst_35 : f32 to vector<1x64xf32>
    %66 = arith.addf %65, %64 : vector<1x64xf32>
    %67 = math.log %66 : vector<1x64xf32>
    %cst_36 = arith.constant -9.800000e-01 : f32
    %68 = vector.broadcast %cst_36 : f32 to vector<1x64xf32>
    %69 = arith.mulf %68, %67 : vector<1x64xf32>
    %70 = math.exp %69 : vector<1x64xf32>
    %71 = vector.extract_strided_slice %6 {offsets = [1, 0], sizes = [1, 64], strides = [1, 1]} : vector<8x64xf32> to vector<1x64xf32>
    %72 = arith.mulf %71, %70 : vector<1x64xf32>
    %cst_37 = arith.constant 2.000000e+00 : f32
    %73 = vector.broadcast %cst_37 : f32 to vector<1x64xf32>
    %74 = arith.addf %72, %73 : vector<1x64xf32>
    %75 = math.sqrt %74 : vector<1x64xf32>
    %cst_38 = arith.constant 1.41421354 : f32
    %76 = vector.broadcast %cst_38 : f32 to vector<1x64xf32>
    %77 = arith.subf %75, %76 : vector<1x64xf32>
    %cst_39 = arith.constant dense<0.000000e+00> : vector<1x64xf32>
    %78 = tpu.matmul %77, %10, %cst_39 {dimension_numbers = #tpu.dot_dimension_numbers<[1], [0], [0], [1], [0, 0, 1, 1], [], []>} : vector<1x64xf32>, vector<64x64xf32>, vector<1x64xf32> -> vector<1x64xf32>
    %cst_40 = arith.constant dense<0.000000e+00> : vector<1x64xf32>
    %79 = tpu.matmul %43, %11, %cst_40 {dimension_numbers = #tpu.dot_dimension_numbers<[1], [0], [0], [1], [0, 0, 1, 1], [], []>} : vector<1x64xf32>, vector<64x64xf32>, vector<1x64xf32> -> vector<1x64xf32>
    %cst_41 = arith.constant dense<0.000000e+00> : vector<1x64xf32>
    %80 = tpu.matmul %78, %12, %cst_41 {dimension_numbers = #tpu.dot_dimension_numbers<[1], [0], [0], [1], [0, 0, 1, 1], [], []>} : vector<1x64xf32>, vector<64x64xf32>, vector<1x64xf32> -> vector<1x64xf32>
    %81 = arith.addf %79, %80 : vector<1x64xf32>
    %82 = arith.addf %81, %16 : vector<1x64xf32>
    %cst_42 = arith.constant 0.000000e+00 : f32
    %83 = vector.broadcast %cst_42 : f32 to vector<1x64xf32>
    %84 = arith.maximumf %82, %83 : vector<1x64xf32>
    %cst_43 = arith.constant dense<0.000000e+00> : vector<1x64xf32>
    %85 = tpu.matmul %23, %13, %cst_43 {dimension_numbers = #tpu.dot_dimension_numbers<[1], [0], [0], [1], [0, 0, 1, 1], [], []>} : vector<1x64xf32>, vector<64x64xf32>, vector<1x64xf32> -> vector<1x64xf32>
    %cst_44 = arith.constant dense<0.000000e+00> : vector<1x64xf32>
    %86 = tpu.matmul %49, %14, %cst_44 {dimension_numbers = #tpu.dot_dimension_numbers<[1], [0], [0], [1], [0, 0, 1, 1], [], []>} : vector<1x64xf32>, vector<64x64xf32>, vector<1x64xf32> -> vector<1x64xf32>
    %87 = arith.addf %85, %86 : vector<1x64xf32>
    %88 = arith.addf %87, %17 : vector<1x64xf32>
    %cst_45 = arith.constant 0.000000e+00 : f32
    %89 = vector.broadcast %cst_45 : f32 to vector<1x64xf32>
    %90 = arith.maximumf %88, %89 : vector<1x64xf32>
    %91 = arith.mulf %90, %18 : vector<1x64xf32>
    %cst_46 = arith.constant dense<0.000000e+00> : vector<1xf32>
    %92 = vector.multi_reduction <add>, %91, %cst_46 [1] : vector<1x64xf32> to vector<1xf32>
    %93 = vector.shape_cast %92 : vector<1xf32> to vector<1x1xf32>
    %94 = vector.extract_strided_slice %64 {offsets = [0, 48], sizes = [1, 16], strides = [1, 1]} : vector<1x64xf32> to vector<1x16xf32>
    %cst_47 = arith.constant dense<0.000000e+00> : vector<1x64xf32>
    %95 = tpu.matmul %94, %9, %cst_47 {dimension_numbers = #tpu.dot_dimension_numbers<[1], [0], [0], [1], [0, 0, 1, 1], [], []>} : vector<1x16xf32>, vector<16x64xf32>, vector<1x64xf32> -> vector<1x64xf32>
    %96 = vector.extract_strided_slice %8 {offsets = [2, 0], sizes = [1, 64], strides = [1, 1]} : vector<8x64xf32> to vector<1x64xf32>
    %97 = arith.addf %95, %96 : vector<1x64xf32>
    %cst_48 = arith.constant 0.000000e+00 : f32
    %98 = vector.broadcast %cst_48 : f32 to vector<1x64xf32>
    %99 = arith.maximumf %97, %98 : vector<1x64xf32>
    %cst_49 = arith.constant 9.99999997E-7 : f32
    %100 = vector.broadcast %cst_49 : f32 to vector<1x64xf32>
    %101 = arith.addf %100, %99 : vector<1x64xf32>
    %102 = math.log %101 : vector<1x64xf32>
    %cst_50 = arith.constant -9.800000e-01 : f32
    %103 = vector.broadcast %cst_50 : f32 to vector<1x64xf32>
    %104 = arith.mulf %103, %102 : vector<1x64xf32>
    %105 = math.exp %104 : vector<1x64xf32>
    %106 = vector.extract_strided_slice %6 {offsets = [2, 0], sizes = [1, 64], strides = [1, 1]} : vector<8x64xf32> to vector<1x64xf32>
    %107 = arith.mulf %106, %105 : vector<1x64xf32>
    %cst_51 = arith.constant 2.000000e+00 : f32
    %108 = vector.broadcast %cst_51 : f32 to vector<1x64xf32>
    %109 = arith.addf %107, %108 : vector<1x64xf32>
    %110 = math.sqrt %109 : vector<1x64xf32>
    %cst_52 = arith.constant 1.41421354 : f32
    %111 = vector.broadcast %cst_52 : f32 to vector<1x64xf32>
    %112 = arith.subf %110, %111 : vector<1x64xf32>
    %cst_53 = arith.constant dense<0.000000e+00> : vector<1x64xf32>
    %113 = tpu.matmul %112, %10, %cst_53 {dimension_numbers = #tpu.dot_dimension_numbers<[1], [0], [0], [1], [0, 0, 1, 1], [], []>} : vector<1x64xf32>, vector<64x64xf32>, vector<1x64xf32> -> vector<1x64xf32>
    %cst_54 = arith.constant dense<0.000000e+00> : vector<1x64xf32>
    %114 = tpu.matmul %78, %11, %cst_54 {dimension_numbers = #tpu.dot_dimension_numbers<[1], [0], [0], [1], [0, 0, 1, 1], [], []>} : vector<1x64xf32>, vector<64x64xf32>, vector<1x64xf32> -> vector<1x64xf32>
    %cst_55 = arith.constant dense<0.000000e+00> : vector<1x64xf32>
    %115 = tpu.matmul %113, %12, %cst_55 {dimension_numbers = #tpu.dot_dimension_numbers<[1], [0], [0], [1], [0, 0, 1, 1], [], []>} : vector<1x64xf32>, vector<64x64xf32>, vector<1x64xf32> -> vector<1x64xf32>
    %116 = arith.addf %114, %115 : vector<1x64xf32>
    %117 = arith.addf %116, %16 : vector<1x64xf32>
    %cst_56 = arith.constant 0.000000e+00 : f32
    %118 = vector.broadcast %cst_56 : f32 to vector<1x64xf32>
    %119 = arith.maximumf %117, %118 : vector<1x64xf32>
    %cst_57 = arith.constant dense<0.000000e+00> : vector<1x64xf32>
    %120 = tpu.matmul %22, %13, %cst_57 {dimension_numbers = #tpu.dot_dimension_numbers<[1], [0], [0], [1], [0, 0, 1, 1], [], []>} : vector<1x64xf32>, vector<64x64xf32>, vector<1x64xf32> -> vector<1x64xf32>
    %cst_58 = arith.constant dense<0.000000e+00> : vector<1x64xf32>
    %121 = tpu.matmul %84, %14, %cst_58 {dimension_numbers = #tpu.dot_dimension_numbers<[1], [0], [0], [1], [0, 0, 1, 1], [], []>} : vector<1x64xf32>, vector<64x64xf32>, vector<1x64xf32> -> vector<1x64xf32>
    %122 = arith.addf %120, %121 : vector<1x64xf32>
    %123 = arith.addf %122, %17 : vector<1x64xf32>
    %cst_59 = arith.constant 0.000000e+00 : f32
    %124 = vector.broadcast %cst_59 : f32 to vector<1x64xf32>
    %125 = arith.maximumf %123, %124 : vector<1x64xf32>
    %126 = arith.mulf %125, %18 : vector<1x64xf32>
    %cst_60 = arith.constant dense<0.000000e+00> : vector<1xf32>
    %127 = vector.multi_reduction <add>, %126, %cst_60 [1] : vector<1x64xf32> to vector<1xf32>
    %128 = vector.shape_cast %127 : vector<1xf32> to vector<1x1xf32>
    %129 = vector.extract_strided_slice %99 {offsets = [0, 48], sizes = [1, 16], strides = [1, 1]} : vector<1x64xf32> to vector<1x16xf32>
    %cst_61 = arith.constant dense<0.000000e+00> : vector<1x64xf32>
    %130 = tpu.matmul %129, %9, %cst_61 {dimension_numbers = #tpu.dot_dimension_numbers<[1], [0], [0], [1], [0, 0, 1, 1], [], []>} : vector<1x16xf32>, vector<16x64xf32>, vector<1x64xf32> -> vector<1x64xf32>
    %131 = vector.extract_strided_slice %8 {offsets = [3, 0], sizes = [1, 64], strides = [1, 1]} : vector<8x64xf32> to vector<1x64xf32>
    %132 = arith.addf %130, %131 : vector<1x64xf32>
    %cst_62 = arith.constant 0.000000e+00 : f32
    %133 = vector.broadcast %cst_62 : f32 to vector<1x64xf32>
    %134 = arith.maximumf %132, %133 : vector<1x64xf32>
    %cst_63 = arith.constant 9.99999997E-7 : f32
    %135 = vector.broadcast %cst_63 : f32 to vector<1x64xf32>
    %136 = arith.addf %135, %134 : vector<1x64xf32>
    %137 = math.log %136 : vector<1x64xf32>
    %cst_64 = arith.constant -9.800000e-01 : f32
    %138 = vector.broadcast %cst_64 : f32 to vector<1x64xf32>
    %139 = arith.mulf %138, %137 : vector<1x64xf32>
    %140 = math.exp %139 : vector<1x64xf32>
    %141 = vector.extract_strided_slice %6 {offsets = [3, 0], sizes = [1, 64], strides = [1, 1]} : vector<8x64xf32> to vector<1x64xf32>
    %142 = arith.mulf %141, %140 : vector<1x64xf32>
    %cst_65 = arith.constant 2.000000e+00 : f32
    %143 = vector.broadcast %cst_65 : f32 to vector<1x64xf32>
    %144 = arith.addf %142, %143 : vector<1x64xf32>
    %145 = math.sqrt %144 : vector<1x64xf32>
    %cst_66 = arith.constant 1.41421354 : f32
    %146 = vector.broadcast %cst_66 : f32 to vector<1x64xf32>
    %147 = arith.subf %145, %146 : vector<1x64xf32>
    %cst_67 = arith.constant dense<0.000000e+00> : vector<1x64xf32>
    %148 = tpu.matmul %147, %10, %cst_67 {dimension_numbers = #tpu.dot_dimension_numbers<[1], [0], [0], [1], [0, 0, 1, 1], [], []>} : vector<1x64xf32>, vector<64x64xf32>, vector<1x64xf32> -> vector<1x64xf32>
    %cst_68 = arith.constant dense<0.000000e+00> : vector<1x64xf32>
    %149 = tpu.matmul %113, %11, %cst_68 {dimension_numbers = #tpu.dot_dimension_numbers<[1], [0], [0], [1], [0, 0, 1, 1], [], []>} : vector<1x64xf32>, vector<64x64xf32>, vector<1x64xf32> -> vector<1x64xf32>
    %cst_69 = arith.constant dense<0.000000e+00> : vector<1x64xf32>
    %150 = tpu.matmul %148, %12, %cst_69 {dimension_numbers = #tpu.dot_dimension_numbers<[1], [0], [0], [1], [0, 0, 1, 1], [], []>} : vector<1x64xf32>, vector<64x64xf32>, vector<1x64xf32> -> vector<1x64xf32>
    %151 = arith.addf %149, %150 : vector<1x64xf32>
    %152 = arith.addf %151, %16 : vector<1x64xf32>
    %cst_70 = arith.constant 0.000000e+00 : f32
    %153 = vector.broadcast %cst_70 : f32 to vector<1x64xf32>
    %154 = arith.maximumf %152, %153 : vector<1x64xf32>
    %cst_71 = arith.constant dense<0.000000e+00> : vector<1x64xf32>
    %155 = tpu.matmul %49, %13, %cst_71 {dimension_numbers = #tpu.dot_dimension_numbers<[1], [0], [0], [1], [0, 0, 1, 1], [], []>} : vector<1x64xf32>, vector<64x64xf32>, vector<1x64xf32> -> vector<1x64xf32>
    %cst_72 = arith.constant dense<0.000000e+00> : vector<1x64xf32>
    %156 = tpu.matmul %119, %14, %cst_72 {dimension_numbers = #tpu.dot_dimension_numbers<[1], [0], [0], [1], [0, 0, 1, 1], [], []>} : vector<1x64xf32>, vector<64x64xf32>, vector<1x64xf32> -> vector<1x64xf32>
    %157 = arith.addf %155, %156 : vector<1x64xf32>
    %158 = arith.addf %157, %17 : vector<1x64xf32>
    %cst_73 = arith.constant 0.000000e+00 : f32
    %159 = vector.broadcast %cst_73 : f32 to vector<1x64xf32>
    %160 = arith.maximumf %158, %159 : vector<1x64xf32>
    %161 = arith.mulf %160, %18 : vector<1x64xf32>
    %cst_74 = arith.constant dense<0.000000e+00> : vector<1xf32>
    %162 = vector.multi_reduction <add>, %161, %cst_74 [1] : vector<1x64xf32> to vector<1xf32>
    %163 = vector.shape_cast %162 : vector<1xf32> to vector<1x1xf32>
    %164 = vector.extract_strided_slice %134 {offsets = [0, 48], sizes = [1, 16], strides = [1, 1]} : vector<1x64xf32> to vector<1x16xf32>
    %cst_75 = arith.constant dense<0.000000e+00> : vector<1x64xf32>
    %165 = tpu.matmul %164, %9, %cst_75 {dimension_numbers = #tpu.dot_dimension_numbers<[1], [0], [0], [1], [0, 0, 1, 1], [], []>} : vector<1x16xf32>, vector<16x64xf32>, vector<1x64xf32> -> vector<1x64xf32>
    %166 = vector.extract_strided_slice %8 {offsets = [4, 0], sizes = [1, 64], strides = [1, 1]} : vector<8x64xf32> to vector<1x64xf32>
    %167 = arith.addf %165, %166 : vector<1x64xf32>
    %cst_76 = arith.constant 0.000000e+00 : f32
    %168 = vector.broadcast %cst_76 : f32 to vector<1x64xf32>
    %169 = arith.maximumf %167, %168 : vector<1x64xf32>
    %cst_77 = arith.constant 9.99999997E-7 : f32
    %170 = vector.broadcast %cst_77 : f32 to vector<1x64xf32>
    %171 = arith.addf %170, %169 : vector<1x64xf32>
    %172 = math.log %171 : vector<1x64xf32>
    %cst_78 = arith.constant -9.800000e-01 : f32
    %173 = vector.broadcast %cst_78 : f32 to vector<1x64xf32>
    %174 = arith.mulf %173, %172 : vector<1x64xf32>
    %175 = math.exp %174 : vector<1x64xf32>
    %176 = vector.extract_strided_slice %6 {offsets = [4, 0], sizes = [1, 64], strides = [1, 1]} : vector<8x64xf32> to vector<1x64xf32>
    %177 = arith.mulf %176, %175 : vector<1x64xf32>
    %cst_79 = arith.constant 2.000000e+00 : f32
    %178 = vector.broadcast %cst_79 : f32 to vector<1x64xf32>
    %179 = arith.addf %177, %178 : vector<1x64xf32>
    %180 = math.sqrt %179 : vector<1x64xf32>
    %cst_80 = arith.constant 1.41421354 : f32
    %181 = vector.broadcast %cst_80 : f32 to vector<1x64xf32>
    %182 = arith.subf %180, %181 : vector<1x64xf32>
    %cst_81 = arith.constant dense<0.000000e+00> : vector<1x64xf32>
    %183 = tpu.matmul %182, %10, %cst_81 {dimension_numbers = #tpu.dot_dimension_numbers<[1], [0], [0], [1], [0, 0, 1, 1], [], []>} : vector<1x64xf32>, vector<64x64xf32>, vector<1x64xf32> -> vector<1x64xf32>
    %cst_82 = arith.constant dense<0.000000e+00> : vector<1x64xf32>
    %184 = tpu.matmul %148, %11, %cst_82 {dimension_numbers = #tpu.dot_dimension_numbers<[1], [0], [0], [1], [0, 0, 1, 1], [], []>} : vector<1x64xf32>, vector<64x64xf32>, vector<1x64xf32> -> vector<1x64xf32>
    %cst_83 = arith.constant dense<0.000000e+00> : vector<1x64xf32>
    %185 = tpu.matmul %183, %12, %cst_83 {dimension_numbers = #tpu.dot_dimension_numbers<[1], [0], [0], [1], [0, 0, 1, 1], [], []>} : vector<1x64xf32>, vector<64x64xf32>, vector<1x64xf32> -> vector<1x64xf32>
    %186 = arith.addf %184, %185 : vector<1x64xf32>
    %187 = arith.addf %186, %16 : vector<1x64xf32>
    %cst_84 = arith.constant 0.000000e+00 : f32
    %188 = vector.broadcast %cst_84 : f32 to vector<1x64xf32>
    %189 = arith.maximumf %187, %188 : vector<1x64xf32>
    %cst_85 = arith.constant dense<0.000000e+00> : vector<1x64xf32>
    %190 = tpu.matmul %84, %13, %cst_85 {dimension_numbers = #tpu.dot_dimension_numbers<[1], [0], [0], [1], [0, 0, 1, 1], [], []>} : vector<1x64xf32>, vector<64x64xf32>, vector<1x64xf32> -> vector<1x64xf32>
    %cst_86 = arith.constant dense<0.000000e+00> : vector<1x64xf32>
    %191 = tpu.matmul %154, %14, %cst_86 {dimension_numbers = #tpu.dot_dimension_numbers<[1], [0], [0], [1], [0, 0, 1, 1], [], []>} : vector<1x64xf32>, vector<64x64xf32>, vector<1x64xf32> -> vector<1x64xf32>
    %192 = arith.addf %190, %191 : vector<1x64xf32>
    %193 = arith.addf %192, %17 : vector<1x64xf32>
    %cst_87 = arith.constant 0.000000e+00 : f32
    %194 = vector.broadcast %cst_87 : f32 to vector<1x64xf32>
    %195 = arith.maximumf %193, %194 : vector<1x64xf32>
    %196 = arith.mulf %195, %18 : vector<1x64xf32>
    %cst_88 = arith.constant dense<0.000000e+00> : vector<1xf32>
    %197 = vector.multi_reduction <add>, %196, %cst_88 [1] : vector<1x64xf32> to vector<1xf32>
    %198 = vector.shape_cast %197 : vector<1xf32> to vector<1x1xf32>
    %199 = vector.extract_strided_slice %169 {offsets = [0, 48], sizes = [1, 16], strides = [1, 1]} : vector<1x64xf32> to vector<1x16xf32>
    %cst_89 = arith.constant dense<0.000000e+00> : vector<1x64xf32>
    %200 = tpu.matmul %199, %9, %cst_89 {dimension_numbers = #tpu.dot_dimension_numbers<[1], [0], [0], [1], [0, 0, 1, 1], [], []>} : vector<1x16xf32>, vector<16x64xf32>, vector<1x64xf32> -> vector<1x64xf32>
    %201 = vector.extract_strided_slice %8 {offsets = [5, 0], sizes = [1, 64], strides = [1, 1]} : vector<8x64xf32> to vector<1x64xf32>
    %202 = arith.addf %200, %201 : vector<1x64xf32>
    %cst_90 = arith.constant 0.000000e+00 : f32
    %203 = vector.broadcast %cst_90 : f32 to vector<1x64xf32>
    %204 = arith.maximumf %202, %203 : vector<1x64xf32>
    %cst_91 = arith.constant 9.99999997E-7 : f32
    %205 = vector.broadcast %cst_91 : f32 to vector<1x64xf32>
    %206 = arith.addf %205, %204 : vector<1x64xf32>
    %207 = math.log %206 : vector<1x64xf32>
    %cst_92 = arith.constant -9.800000e-01 : f32
    %208 = vector.broadcast %cst_92 : f32 to vector<1x64xf32>
    %209 = arith.mulf %208, %207 : vector<1x64xf32>
    %210 = math.exp %209 : vector<1x64xf32>
    %211 = vector.extract_strided_slice %6 {offsets = [5, 0], sizes = [1, 64], strides = [1, 1]} : vector<8x64xf32> to vector<1x64xf32>
    %212 = arith.mulf %211, %210 : vector<1x64xf32>
    %cst_93 = arith.constant 2.000000e+00 : f32
    %213 = vector.broadcast %cst_93 : f32 to vector<1x64xf32>
    %214 = arith.addf %212, %213 : vector<1x64xf32>
    %215 = math.sqrt %214 : vector<1x64xf32>
    %cst_94 = arith.constant 1.41421354 : f32
    %216 = vector.broadcast %cst_94 : f32 to vector<1x64xf32>
    %217 = arith.subf %215, %216 : vector<1x64xf32>
    %cst_95 = arith.constant dense<0.000000e+00> : vector<1x64xf32>
    %218 = tpu.matmul %217, %10, %cst_95 {dimension_numbers = #tpu.dot_dimension_numbers<[1], [0], [0], [1], [0, 0, 1, 1], [], []>} : vector<1x64xf32>, vector<64x64xf32>, vector<1x64xf32> -> vector<1x64xf32>
    %cst_96 = arith.constant dense<0.000000e+00> : vector<1x64xf32>
    %219 = tpu.matmul %183, %11, %cst_96 {dimension_numbers = #tpu.dot_dimension_numbers<[1], [0], [0], [1], [0, 0, 1, 1], [], []>} : vector<1x64xf32>, vector<64x64xf32>, vector<1x64xf32> -> vector<1x64xf32>
    %cst_97 = arith.constant dense<0.000000e+00> : vector<1x64xf32>
    %220 = tpu.matmul %218, %12, %cst_97 {dimension_numbers = #tpu.dot_dimension_numbers<[1], [0], [0], [1], [0, 0, 1, 1], [], []>} : vector<1x64xf32>, vector<64x64xf32>, vector<1x64xf32> -> vector<1x64xf32>
    %221 = arith.addf %219, %220 : vector<1x64xf32>
    %222 = arith.addf %221, %16 : vector<1x64xf32>
    %cst_98 = arith.constant 0.000000e+00 : f32
    %223 = vector.broadcast %cst_98 : f32 to vector<1x64xf32>
    %224 = arith.maximumf %222, %223 : vector<1x64xf32>
    %cst_99 = arith.constant dense<0.000000e+00> : vector<1x64xf32>
    %225 = tpu.matmul %119, %13, %cst_99 {dimension_numbers = #tpu.dot_dimension_numbers<[1], [0], [0], [1], [0, 0, 1, 1], [], []>} : vector<1x64xf32>, vector<64x64xf32>, vector<1x64xf32> -> vector<1x64xf32>
    %cst_100 = arith.constant dense<0.000000e+00> : vector<1x64xf32>
    %226 = tpu.matmul %189, %14, %cst_100 {dimension_numbers = #tpu.dot_dimension_numbers<[1], [0], [0], [1], [0, 0, 1, 1], [], []>} : vector<1x64xf32>, vector<64x64xf32>, vector<1x64xf32> -> vector<1x64xf32>
    %227 = arith.addf %225, %226 : vector<1x64xf32>
    %228 = arith.addf %227, %17 : vector<1x64xf32>
    %cst_101 = arith.constant 0.000000e+00 : f32
    %229 = vector.broadcast %cst_101 : f32 to vector<1x64xf32>
    %230 = arith.maximumf %228, %229 : vector<1x64xf32>
    %231 = arith.mulf %230, %18 : vector<1x64xf32>
    %cst_102 = arith.constant dense<0.000000e+00> : vector<1xf32>
    %232 = vector.multi_reduction <add>, %231, %cst_102 [1] : vector<1x64xf32> to vector<1xf32>
    %233 = vector.shape_cast %232 : vector<1xf32> to vector<1x1xf32>
    %234 = vector.extract_strided_slice %204 {offsets = [0, 48], sizes = [1, 16], strides = [1, 1]} : vector<1x64xf32> to vector<1x16xf32>
    %cst_103 = arith.constant dense<0.000000e+00> : vector<1x64xf32>
    %235 = tpu.matmul %234, %9, %cst_103 {dimension_numbers = #tpu.dot_dimension_numbers<[1], [0], [0], [1], [0, 0, 1, 1], [], []>} : vector<1x16xf32>, vector<16x64xf32>, vector<1x64xf32> -> vector<1x64xf32>
    %236 = vector.extract_strided_slice %8 {offsets = [6, 0], sizes = [1, 64], strides = [1, 1]} : vector<8x64xf32> to vector<1x64xf32>
    %237 = arith.addf %235, %236 : vector<1x64xf32>
    %cst_104 = arith.constant 0.000000e+00 : f32
    %238 = vector.broadcast %cst_104 : f32 to vector<1x64xf32>
    %239 = arith.maximumf %237, %238 : vector<1x64xf32>
    %cst_105 = arith.constant 9.99999997E-7 : f32
    %240 = vector.broadcast %cst_105 : f32 to vector<1x64xf32>
    %241 = arith.addf %240, %239 : vector<1x64xf32>
    %242 = math.log %241 : vector<1x64xf32>
    %cst_106 = arith.constant -9.800000e-01 : f32
    %243 = vector.broadcast %cst_106 : f32 to vector<1x64xf32>
    %244 = arith.mulf %243, %242 : vector<1x64xf32>
    %245 = math.exp %244 : vector<1x64xf32>
    %246 = vector.extract_strided_slice %6 {offsets = [6, 0], sizes = [1, 64], strides = [1, 1]} : vector<8x64xf32> to vector<1x64xf32>
    %247 = arith.mulf %246, %245 : vector<1x64xf32>
    %cst_107 = arith.constant 2.000000e+00 : f32
    %248 = vector.broadcast %cst_107 : f32 to vector<1x64xf32>
    %249 = arith.addf %247, %248 : vector<1x64xf32>
    %250 = math.sqrt %249 : vector<1x64xf32>
    %cst_108 = arith.constant 1.41421354 : f32
    %251 = vector.broadcast %cst_108 : f32 to vector<1x64xf32>
    %252 = arith.subf %250, %251 : vector<1x64xf32>
    %cst_109 = arith.constant dense<0.000000e+00> : vector<1x64xf32>
    %253 = tpu.matmul %252, %10, %cst_109 {dimension_numbers = #tpu.dot_dimension_numbers<[1], [0], [0], [1], [0, 0, 1, 1], [], []>} : vector<1x64xf32>, vector<64x64xf32>, vector<1x64xf32> -> vector<1x64xf32>
    %cst_110 = arith.constant dense<0.000000e+00> : vector<1x64xf32>
    %254 = tpu.matmul %218, %11, %cst_110 {dimension_numbers = #tpu.dot_dimension_numbers<[1], [0], [0], [1], [0, 0, 1, 1], [], []>} : vector<1x64xf32>, vector<64x64xf32>, vector<1x64xf32> -> vector<1x64xf32>
    %cst_111 = arith.constant dense<0.000000e+00> : vector<1x64xf32>
    %255 = tpu.matmul %253, %12, %cst_111 {dimension_numbers = #tpu.dot_dimension_numbers<[1], [0], [0], [1], [0, 0, 1, 1], [], []>} : vector<1x64xf32>, vector<64x64xf32>, vector<1x64xf32> -> vector<1x64xf32>
    %256 = arith.addf %254, %255 : vector<1x64xf32>
    %257 = arith.addf %256, %16 : vector<1x64xf32>
    %cst_112 = arith.constant 0.000000e+00 : f32
    %258 = vector.broadcast %cst_112 : f32 to vector<1x64xf32>
    %259 = arith.maximumf %257, %258 : vector<1x64xf32>
    %cst_113 = arith.constant dense<0.000000e+00> : vector<1x64xf32>
    %260 = tpu.matmul %154, %13, %cst_113 {dimension_numbers = #tpu.dot_dimension_numbers<[1], [0], [0], [1], [0, 0, 1, 1], [], []>} : vector<1x64xf32>, vector<64x64xf32>, vector<1x64xf32> -> vector<1x64xf32>
    %cst_114 = arith.constant dense<0.000000e+00> : vector<1x64xf32>
    %261 = tpu.matmul %224, %14, %cst_114 {dimension_numbers = #tpu.dot_dimension_numbers<[1], [0], [0], [1], [0, 0, 1, 1], [], []>} : vector<1x64xf32>, vector<64x64xf32>, vector<1x64xf32> -> vector<1x64xf32>
    %262 = arith.addf %260, %261 : vector<1x64xf32>
    %263 = arith.addf %262, %17 : vector<1x64xf32>
    %cst_115 = arith.constant 0.000000e+00 : f32
    %264 = vector.broadcast %cst_115 : f32 to vector<1x64xf32>
    %265 = arith.maximumf %263, %264 : vector<1x64xf32>
    %266 = arith.mulf %265, %18 : vector<1x64xf32>
    %cst_116 = arith.constant dense<0.000000e+00> : vector<1xf32>
    %267 = vector.multi_reduction <add>, %266, %cst_116 [1] : vector<1x64xf32> to vector<1xf32>
    %268 = vector.shape_cast %267 : vector<1xf32> to vector<1x1xf32>
    %269 = vector.extract_strided_slice %239 {offsets = [0, 48], sizes = [1, 16], strides = [1, 1]} : vector<1x64xf32> to vector<1x16xf32>
    %cst_117 = arith.constant dense<0.000000e+00> : vector<1x64xf32>
    %270 = tpu.matmul %269, %9, %cst_117 {dimension_numbers = #tpu.dot_dimension_numbers<[1], [0], [0], [1], [0, 0, 1, 1], [], []>} : vector<1x16xf32>, vector<16x64xf32>, vector<1x64xf32> -> vector<1x64xf32>
    %271 = vector.extract_strided_slice %8 {offsets = [7, 0], sizes = [1, 64], strides = [1, 1]} : vector<8x64xf32> to vector<1x64xf32>
    %272 = arith.addf %270, %271 : vector<1x64xf32>
    %cst_118 = arith.constant 0.000000e+00 : f32
    %273 = vector.broadcast %cst_118 : f32 to vector<1x64xf32>
    %274 = arith.maximumf %272, %273 : vector<1x64xf32>
    %cst_119 = arith.constant 9.99999997E-7 : f32
    %275 = vector.broadcast %cst_119 : f32 to vector<1x64xf32>
    %276 = arith.addf %275, %274 : vector<1x64xf32>
    %277 = math.log %276 : vector<1x64xf32>
    %cst_120 = arith.constant -9.800000e-01 : f32
    %278 = vector.broadcast %cst_120 : f32 to vector<1x64xf32>
    %279 = arith.mulf %278, %277 : vector<1x64xf32>
    %280 = math.exp %279 : vector<1x64xf32>
    %281 = vector.extract_strided_slice %6 {offsets = [7, 0], sizes = [1, 64], strides = [1, 1]} : vector<8x64xf32> to vector<1x64xf32>
    %282 = arith.mulf %281, %280 : vector<1x64xf32>
    %cst_121 = arith.constant 2.000000e+00 : f32
    %283 = vector.broadcast %cst_121 : f32 to vector<1x64xf32>
    %284 = arith.addf %282, %283 : vector<1x64xf32>
    %285 = math.sqrt %284 : vector<1x64xf32>
    %cst_122 = arith.constant 1.41421354 : f32
    %286 = vector.broadcast %cst_122 : f32 to vector<1x64xf32>
    %287 = arith.subf %285, %286 : vector<1x64xf32>
    %cst_123 = arith.constant dense<0.000000e+00> : vector<1x64xf32>
    %288 = tpu.matmul %287, %10, %cst_123 {dimension_numbers = #tpu.dot_dimension_numbers<[1], [0], [0], [1], [0, 0, 1, 1], [], []>} : vector<1x64xf32>, vector<64x64xf32>, vector<1x64xf32> -> vector<1x64xf32>
    %cst_124 = arith.constant dense<0.000000e+00> : vector<1x64xf32>
    %289 = tpu.matmul %253, %11, %cst_124 {dimension_numbers = #tpu.dot_dimension_numbers<[1], [0], [0], [1], [0, 0, 1, 1], [], []>} : vector<1x64xf32>, vector<64x64xf32>, vector<1x64xf32> -> vector<1x64xf32>
    %cst_125 = arith.constant dense<0.000000e+00> : vector<1x64xf32>
    %290 = tpu.matmul %288, %12, %cst_125 {dimension_numbers = #tpu.dot_dimension_numbers<[1], [0], [0], [1], [0, 0, 1, 1], [], []>} : vector<1x64xf32>, vector<64x64xf32>, vector<1x64xf32> -> vector<1x64xf32>
    %291 = arith.addf %289, %290 : vector<1x64xf32>
    %292 = arith.addf %291, %16 : vector<1x64xf32>
    %cst_126 = arith.constant 0.000000e+00 : f32
    %293 = vector.broadcast %cst_126 : f32 to vector<1x64xf32>
    %294 = arith.maximumf %292, %293 : vector<1x64xf32>
    %cst_127 = arith.constant dense<0.000000e+00> : vector<1x64xf32>
    %295 = tpu.matmul %189, %13, %cst_127 {dimension_numbers = #tpu.dot_dimension_numbers<[1], [0], [0], [1], [0, 0, 1, 1], [], []>} : vector<1x64xf32>, vector<64x64xf32>, vector<1x64xf32> -> vector<1x64xf32>
    %cst_128 = arith.constant dense<0.000000e+00> : vector<1x64xf32>
    %296 = tpu.matmul %259, %14, %cst_128 {dimension_numbers = #tpu.dot_dimension_numbers<[1], [0], [0], [1], [0, 0, 1, 1], [], []>} : vector<1x64xf32>, vector<64x64xf32>, vector<1x64xf32> -> vector<1x64xf32>
    %297 = arith.addf %295, %296 : vector<1x64xf32>
    %298 = arith.addf %297, %17 : vector<1x64xf32>
    %cst_129 = arith.constant 0.000000e+00 : f32
    %299 = vector.broadcast %cst_129 : f32 to vector<1x64xf32>
    %300 = arith.maximumf %298, %299 : vector<1x64xf32>
    %301 = arith.mulf %300, %18 : vector<1x64xf32>
    %cst_130 = arith.constant dense<0.000000e+00> : vector<1xf32>
    %302 = vector.multi_reduction <add>, %301, %cst_130 [1] : vector<1x64xf32> to vector<1xf32>
    %303 = vector.shape_cast %302 : vector<1xf32> to vector<1x1xf32>
    %304 = vector.extract_strided_slice %274 {offsets = [0, 48], sizes = [1, 16], strides = [1, 1]} : vector<1x64xf32> to vector<1x16xf32>
    %305 = tpu.concatenate %58, %93, %128, %163, %198, %233, %268, %303 in 1 : vector<1x1xf32>, vector<1x1xf32>, vector<1x1xf32>, vector<1x1xf32>, vector<1x1xf32>, vector<1x1xf32>, vector<1x1xf32>, vector<1x1xf32> -> vector<1x8xf32>
    %306 = vector.broadcast %19 : vector<1x1xf32> to vector<1x8xf32>
    %307 = arith.addf %305, %306 : vector<1x8xf32>
    %308 = arith.negf %307 : vector<1x8xf32>
    %309 = math.exp %308 : vector<1x8xf32>
    %cst_131 = arith.constant 1.000000e+00 : f32
    %310 = vector.broadcast %cst_131 : f32 to vector<1x8xf32>
    %311 = arith.addf %310, %309 : vector<1x8xf32>
    %312 = arith.divf %310, %311 : vector<1x8xf32>
    %cst_132 = arith.constant 0.000000e+00 : f32
    %313 = vector.broadcast %cst_132 : f32 to vector<1x120xf32>
    %314 = tpu.concatenate %312, %313 in 1 : vector<1x8xf32>, vector<1x120xf32> -> vector<1x128xf32>
    %315 = arith.index_cast %arg0 : i32 to index
    %c0_133 = arith.constant 0 : index
    %316 = vector.load %arg4[%315, %c0_133] : memref<4x128xf32, #tpu.memory_space<vmem>>, vector<1x128xf32>
    tpu.vector_store %arg4[%315, %c0_133], %314 {strides = array<i32>} : memref<4x128xf32, #tpu.memory_space<vmem>>, vector<1x128xf32>,
    %c0_134 = arith.constant 0 : index
    %c0_135 = arith.constant 0 : index
    %317 = vector.load %arg5[%c0_134, %c0_135] : memref<8x128xf32, #tpu.memory_space<vmem>>, vector<1x16xf32>
    tpu.vector_store %arg5[%c0_134, %c0_135], %304 {strides = array<i32>} : memref<8x128xf32, #tpu.memory_space<vmem>>, vector<1x16xf32>,
    %c1_136 = arith.constant 1 : index
    %c0_137 = arith.constant 0 : index
    %318 = vector.load %arg5[%c1_136, %c0_137] : memref<8x128xf32, #tpu.memory_space<vmem>>, vector<1x64xf32>
    tpu.vector_store %arg5[%c1_136, %c0_137], %288 {strides = array<i32>} : memref<8x128xf32, #tpu.memory_space<vmem>>, vector<1x64xf32>,
    %c2 = arith.constant 2 : index
    %c0_138 = arith.constant 0 : index
    %319 = vector.load %arg5[%c2, %c0_138] : memref<8x128xf32, #tpu.memory_space<vmem>>, vector<1x64xf32>
    tpu.vector_store %arg5[%c2, %c0_138], %253 {strides = array<i32>} : memref<8x128xf32, #tpu.memory_space<vmem>>, vector<1x64xf32>,
    %c3_139 = arith.constant 3 : index
    %c0_140 = arith.constant 0 : index
    %320 = vector.load %arg5[%c3_139, %c0_140] : memref<8x128xf32, #tpu.memory_space<vmem>>, vector<1x64xf32>
    tpu.vector_store %arg5[%c3_139, %c0_140], %294 {strides = array<i32>} : memref<8x128xf32, #tpu.memory_space<vmem>>, vector<1x64xf32>,
    %c4_141 = arith.constant 4 : index
    %c0_142 = arith.constant 0 : index
    %321 = vector.load %arg5[%c4_141, %c0_142] : memref<8x128xf32, #tpu.memory_space<vmem>>, vector<1x64xf32>
    tpu.vector_store %arg5[%c4_141, %c0_142], %259 {strides = array<i32>} : memref<8x128xf32, #tpu.memory_space<vmem>>, vector<1x64xf32>,
    %c5_143 = arith.constant 5 : index
    %c0_144 = arith.constant 0 : index
    %322 = vector.load %arg5[%c5_143, %c0_144] : memref<8x128xf32, #tpu.memory_space<vmem>>, vector<1x64xf32>
    tpu.vector_store %arg5[%c5_143, %c0_144], %224 {strides = array<i32>} : memref<8x128xf32, #tpu.memory_space<vmem>>, vector<1x64xf32>,
    %c6 = arith.constant 6 : index
    %c0_145 = arith.constant 0 : index
    %323 = vector.load %arg5[%c6, %c0_145] : memref<8x128xf32, #tpu.memory_space<vmem>>, vector<1x64xf32>
    tpu.vector_store %arg5[%c6, %c0_145], %189 {strides = array<i32>} : memref<8x128xf32, #tpu.memory_space<vmem>>, vector<1x64xf32>,
    return
  }
  func.func @transform_0(%arg0: i32) -> (i32, i32) {
    %c0_i32 = arith.constant 0 : i32
    %c0_i32_0 = arith.constant 0 : i32
    return %arg0, %c0_i32 : i32, i32
  }
  func.func @transform_1(%arg0: i32) -> (i32, i32) {
    %c0_i32 = arith.constant 0 : i32
    %c0_i32_0 = arith.constant 0 : i32
    %c0_i32_1 = arith.constant 0 : i32
    return %c0_i32, %c0_i32_0 : i32, i32
  }
  func.func @transform_2(%arg0: i32) -> (i32, i32) {
    %c0_i32 = arith.constant 0 : i32
    %c0_i32_0 = arith.constant 0 : i32
    %c0_i32_1 = arith.constant 0 : i32
    return %c0_i32, %c0_i32_0 : i32, i32
  }
  func.func @transform_3(%arg0: i32) -> (i32, i32) {
    %c0_i32 = arith.constant 0 : i32
    %c0_i32_0 = arith.constant 0 : i32
    %c0_i32_1 = arith.constant 0 : i32
    return %c0_i32, %c0_i32_0 : i32, i32
  }
  func.func @transform_4(%arg0: i32) -> (i32, i32) {
    %c0_i32 = arith.constant 0 : i32
    %c0_i32_0 = arith.constant 0 : i32
    %c0_i32_1 = arith.constant 0 : i32
    return %c0_i32, %c0_i32_0 : i32, i32
  }
}

</mosaic_0001>

<bundles_post_ra>
// kernel: tpu_custom_call.1
= control target key start
LH: loop header
LB: loop body
LE: loop exit
PB: predicated region body
PF: predicated region fallthrough
CT: control target
= control target key end

     0   :  { %10 = vsyncpa [#allocation3], 0  ;;  %s3091_s0 = inlined_call_operand.vmem [shape: f32[32,80], index: 0, kind: input, shape index: {}]   ;;  %s3092_s1 = inlined_call_operand.vmem [shape: f32[488,64], index: 1, kind: input, shape index: {}]   ;;  %s3093_s2 = inlined_call_operand.vmem [shape: f32[8,128], index: 2, kind: input, shape index: {}]   ;;  %s3094_s3 = inlined_call_operand.hbm [shape: f32[4,128], index: 3, kind: output, shape index: {0}]   ;;  %s3095_s4 = inlined_call_operand.hbm [shape: f32[8,128], index: 4, kind: output, shape index: {1}]  }
   0x1   :  { %11 = vsyncpa [#allocation5], 0  ;;  %s2096_s15 = smov 0  }
   0x2 LB: > { %s2102_s16 = sadd.s32 4294967295, %s2065_s15   ;;  %p1802_p0 = scmp.ge.s32.totalorder %s2065_s15, 1  ;;  %s2065_s15 = sphi %s2096_s15, %s17_s15  }
   0x3   : > { %p156_p1 = scmp.lt.s32.totalorder %s2065_s15, 5 }
   0x5   : > { %p157_p2 = pnand %p1802_p0, %p156_p1 }
   0x7   : > { %160 = sbr.rel (%p157_p2) target bundleno = 2835 (0xb13), region = 32 }
   0xc   : > { %p176_p3 = scmp.lt.s32.totalorder %s2102_s16, 3  ;;  %p1804_p4 = scmp.ne.s32.totalorder %s2102_s16, 0 }
   0xe   : > { %s177_s17 = scalar_select %p176_p3, %s2102_s16, 3 }
   0xf   : > { %183 = sbr.rel (%p1804_p4) target bundleno = 22 (0x16), region = 36 }
  0x10   : > { %s1803_s18 = sshll.u32 %s177_s17, 3 }
  0x11   : > { %s2111_s21 = scalar_lea.vmem %s3091_s0, %s1803_s18 }
  0x14   : > { %v184_v0 = vld [vmem:[%s3093_s2] sm:$0xff] }
  0x15   : > { %185 = vst [vmem:[#allocation4] sm:$0xff] %v184_v0 }
  0x16 PF: > { %v196_v1 = vld [vmem:[%s3092_s1 + $0x48] sm:$0xff]  ;;  %v195_v2 = vld [vmem:[%s3092_s1 + $0x40] sm:$0xff]  ;;  %v194_v3 = vld [vmem:[%s3092_s1 + $0x38] sm:$0xff]  ;;  %vm302_vm0 = vcmask 130048   ;;  %vm197_vm1 = vcmask 654336   ;;  %vm230_vm2 = vcmask 523264  }
  0x17   : > { %207 = vmatpush.msra.mxu0 %v196_v1  ;;  %v229_v4 = vld [vmem:[%s3092_s1 + $0x98] sm:$0xff]  ;;  %v193_v5 = vld [vmem:[%s3092_s1 + $0x30] sm:$0xff]  ;;  %v227_v7 = vld [vmem:[%s3092_s1 + $0x88] sm:$0xff]  ;;  %s2067_s27 = smov 80   ;;  %vm473_vm9 = vcmask 516096   ;;  %s1746_s28 = sshll.u32 %s3095_s4, 4  ;;  %s1747_s28 = int_to_ptr.hbm [resolvable:$true] %s1746_s28 }
  0x18   : > { %242 = vmatpush.msra.mxu1 %v229_v4  ;;  %v228_v6 = vld [vmem:[%s3092_s1 + $0x90] sm:$0xff]  ;;  %v2141_v8 = vld [vmem:[%s3092_s1 + $0x58] sm:$0xff]  ;;  %v192_v10 = vld [vmem:[%s3092_s1 + $0x28] sm:$0xff]  ;;  %p1882_p5 = scmp.eq.s32.totalorder %s2102_s16, 3  ;;  %s2070_s29 = smov [#allocation2]  }
  0x19   : > { %208 = vmatpush.msra.mxu0 %v195_v2  ;;  %v2146_v9 = vld [vmem:[%s3092_s1 + $0x50] sm:$0xff]  ;;  %320 = vmatpush.msra.mxu2 %v2141_v8  ;;  %v226_v12 = vld [vmem:[%s3092_s1 + $0x80] sm:$0xff]  ;;  %v225_v14 = vld [vmem:[%s3092_s1 + $0x78] sm:$0xff]  ;;  %s1732_s30 = sshll.u32 %s2070_s29, 4  ;;  %s1734_s7 = sshll.u32 %s3094_s3, 4  ;;  %s1733_s30 = int_to_ptr.vmem [resolvable:$true] %s1732_s30  ;;  %s1735_s7 = int_to_ptr.hbm [resolvable:$true] %s1734_s7 }
  0x1a   : > { %243 = vmatpush.msra.mxu1 %v228_v6  ;;  %v191_v13 = vld [vmem:[%s3092_s1 + $0x20] sm:$0xff]  ;;  %v190_v15 = vld [vmem:[%s3092_s1 + $0x18] sm:$0xff]  ;;  %v224_v16 = vld [vmem:[%s3092_s1 + $0x70] sm:$0xff]  ;;  %s1871_s8 = scalar_lea.vmem [#allocation2], %s2065_s15 }
  0x1b   : > { %209 = vmatpush.msra.mxu0 %v194_v3  ;;  %321 = vmatpush.msra.mxu2 %v2146_v9  ;;  %v189_v17 = vld [vmem:[%s3092_s1 + $0x10] sm:$0xff]  ;;  %v188_v18 = vld [vmem:[%s3092_s1 + $0x8] sm:$0xff]  ;;  %v187_v19 = vld [vmem:[%s3092_s1] sm:$0xff] }
  0x1c   : > { %v297_v11 = vld [vmem:[#allocation4] sm:$0x1]  ;;  %244 = vmatpush.msra.mxu1 %v227_v7  ;;  %v223_v21 = vld [vmem:[%s3092_s1 + $0x68] sm:$0xff]  ;;  %v2192_v25 = vld [vmem:[%s3092_s1 + $0xd8] sm:$0xff] }
  0x1d   : > { %210 = vmatpush.msra.mxu0 %v193_v5  ;;  %1807 = vmatmul.msk.f32.vlgmr.msra.gmra.mxu2 %vm302_vm0, %v297_v11  ;;  %v186_v20 = vld [vmem:[%s2111_s21] sm:$0xff]  ;;  %v2197_v26 = vld [vmem:[%s3092_s1 + $0xd0] sm:$0xff]  ;;  %v2203_v28 = vld [vmem:[%s3092_s1 + $0xc8] sm:$0xff] }
  0x1e   : > { %245 = vmatpush.msra.mxu1 %v226_v12  ;;  %v222_v22 = vld [vmem:[%s3092_s1 + $0x60] sm:$0xff]  ;;  %359 = vmatpush.msra.mxu3 %v2192_v25  ;;  %v2218_v33 = vld [vmem:[%s3092_s1 + $0xb8] sm:$0xff]  ;;  %v2225_v35 = vld [vmem:[%s3092_s1 + $0xb0] sm:$0xff] }
  0x1f   : > { %211 = vmatpush.msra.mxu0 %v192_v10  ;;  %v2212_v31 = vld [vmem:[%s3092_s1 + $0xc0] sm:$0xff]  ;;  %v2231_v36 = vld [vmem:[%s3092_s1 + $0xa8] sm:$0xff]  ;;  %v2246_v56 = vld [vmem:[%s3092_s1 + $0x1d8] sm:$0xff] }
  0x20   : > { %246 = vmatpush.msra.mxu1 %v225_v14  ;;  %360 = vmatpush.msra.mxu3 %v2197_v26  ;;  %v2237_v37 = vld [vmem:[%s3092_s1 + $0xa0] sm:$0xff]  ;;  %v2251_v57 = vld [vmem:[%s3092_s1 + $0x1d0] sm:$0xff]  ;;  %v2257_v58 = vld [vmem:[%s3092_s1 + $0x1c8] sm:$0xff] }
  0x21   : > { %212 = vmatpush.msra.mxu0 %v191_v13  ;;  %v2262_v59 = vld [vmem:[%s3092_s1 + $0x158] sm:$0xff]  ;;  %v2274_v61 = vld [vmem:[%s3092_s1 + $0x150] sm:$0xff]  ;;  %v2279_v62 = vld [vmem:[%s3092_s1 + $0x1c0] sm:$0xff] }
  0x22   : > { %247 = vmatpush.msra.mxu1 %v224_v16  ;;  %361 = vmatpush.msra.mxu3 %v2203_v28  ;;  %v2269_v60 = vld [vmem:[%s3092_s1 + $0x118] sm:$0xff]  ;;  %v2284_v63 = vld [vmem:[%s3092_s1 + $0x148] sm:$0xff]  ;;  %v2292_v0 = vld [vmem:[%s3092_s1 + $0x110] sm:$0xff] }
  0x23   : > { %213 = vmatpush.msra.mxu0 %v190_v15  ;;  %382 = vmatpush.msrb.mxu2 %v2262_v59  ;;  %v2297_v1 = vld [vmem:[%s3092_s1 + $0x1b8] sm:$0xff]  ;;  %v2302_v2 = vld [vmem:[%s3092_s1 + $0x140] sm:$0xff]  ;;  %v2310_v3 = vld [vmem:[%s3092_s1 + $0x108] sm:$0xff] }
  0x24   : > { %248 = vmatpush.msra.mxu1 %v223_v21  ;;  %362 = vmatpush.msra.mxu3 %v2212_v31  ;;  %v2315_v4 = vld [vmem:[%s3092_s1 + $0x1b0] sm:$0xff]  ;;  %v2320_v5 = vld [vmem:[%s3092_s1 + $0x138] sm:$0xff]  ;;  %v2328_v6 = vld [vmem:[%s3092_s1 + $0x100] sm:$0xff] }
  0x25   : > { %214 = vmatpush.msra.mxu0 %v189_v17  ;;  %383 = vmatpush.msrb.mxu2 %v2274_v61  ;;  %v2333_v7 = vld [vmem:[%s3092_s1 + $0x1a8] sm:$0xff]  ;;  %v2338_v10 = vld [vmem:[%s3092_s1 + $0x130] sm:$0xff]  ;;  %v2346_v11 = vld [vmem:[%s3092_s1 + $0xf8] sm:$0xff] }
  0x26   : > { %249 = vmatpush.msra.mxu1 %v222_v22  ;;  %363 = vmatpush.msra.mxu3 %v2218_v33  ;;  %v2351_v12 = vld [vmem:[%s3092_s1 + $0x1a0] sm:$0xff]  ;;  %v2356_v13 = vld [vmem:[%s3092_s1 + $0x128] sm:$0xff]  ;;  %v2364_v14 = vld [vmem:[%s3092_s1 + $0xf0] sm:$0xff] }
  0x27   : > { %215 = vmatpush.msra.mxu0 %v188_v18  ;;  %384 = vmatpush.msrb.mxu2 %v2284_v63  ;;  %v2366_v15 = vld [vmem:[#allocation4 + $0x3] sm:$0x1]  ;;  %v2374_v16 = vld [vmem:[%s3092_s1 + $0xe8] sm:$0xff]  ;;  %v2417_v21 = vld [vmem:[%s3092_s1 + $0x190] sm:$0xff] }
  0x28   : > { %364 = vmatpush.msra.mxu3 %v2225_v35  ;;  %405 = vmatpush.msrb.mxu1 %v2269_v60  ;;  %v2389_v17 = vld [vmem:[%s3092_s1 + $0x120] sm:$0xff]  ;;  %v2425_v22 = vld [vmem:[%s3092_s1 + $0x188] sm:$0xff] }
  0x29   : > { %216 = vmatpush.msra.mxu0 %v187_v19  ;;  %385 = vmatpush.msrb.mxu2 %v2302_v2  ;;  %v2394_v18 = vld [vmem:[%s3092_s1 + $0xe0] sm:$0xff] }
  0x2a   : > { %1805 = vmatmul.msk.f32.vlgmr.msra.gmra.mxu0 %vm197_vm1, %v186_v20  ;;  %365 = vmatpush.msra.mxu3 %v2231_v36  ;;  %3101 = vst [vmem:[#allocation8_spill] sm:$0xff] %v2394_v18  ;;  %v298_v19 = vld [vmem:[#allocation4 + $0x1] sm:$0x1]  ;;  %v2412_v20 = vld [vmem:[%s3092_s1 + $0x198] sm:$0xff] }
  0x2b   : > { %406 = vmatpush.msrb.mxu1 %v2292_v0  ;;  %386 = vmatpush.msrb.mxu2 %v2320_v5 }
  0x2c   : > { %366 = vmatpush.msra.mxu3 %v2237_v37  ;;  %453 = vmatpush.msrb.mxu0 %v2412_v20 }
  0x2d   : > { %407 = vmatpush.msrb.mxu1 %v2310_v3  ;;  %387 = vmatpush.msrb.mxu2 %v2338_v10 }
  0x2e   : > { %430 = vmatpush.msrb.mxu3 %v2246_v56  ;;  %454 = vmatpush.msrb.mxu0 %v2417_v21 }
  0x2f   : > { %408 = vmatpush.msrb.mxu1 %v2328_v6  ;;  %388 = vmatpush.msrb.mxu2 %v2356_v13 }
  0x30   : > { %431 = vmatpush.msrb.mxu3 %v2251_v57  ;;  %455 = vmatpush.msrb.mxu0 %v2425_v22 }
  0x31   : > { %409 = vmatpush.msrb.mxu1 %v2346_v11  ;;  %389 = vmatpush.msrb.mxu2 %v2389_v17 }
  0x32   : > { %432 = vmatpush.msrb.mxu3 %v2257_v58 }
  0x33   : > { %410 = vmatpush.msrb.mxu1 %v2364_v14  ;;  %499 = vmatpush.msra.mxu2 %v2141_v8 }
  0x34   : > { %433 = vmatpush.msrb.mxu3 %v2279_v62 }
  0x35   : > { %411 = vmatpush.msrb.mxu1 %v2374_v16  ;;  %500 = vmatpush.msra.mxu2 %v2146_v9 }
  0x36   : > { %434 = vmatpush.msrb.mxu3 %v2297_v1 }
  0x37   : > { %412 = vmatpush.msrb.mxu1 %v2394_v18 }
  0x38   : > { %435 = vmatpush.msrb.mxu3 %v2315_v4 }
  0x3a   : > { %436 = vmatpush.msrb.mxu3 %v2333_v7 }
  0x3c   : > { %437 = vmatpush.msrb.mxu3 %v2351_v12 }
  0xa0   : > { %v323_v27 = vpop.f32.mrf.mxu2 }
  0xa7   : > { %v218_v23 = vpop.f32.mrf.mxu0 }
  0xa8   : > { %v2185_v24 = vmul.f32 %v218_v23, %v218_v23  ;;  %v2433_v23 = vld [vmem:[%s3092_s1 + $0x180] sm:$0xff] }
  0xa9   : > { %456 = vmatpush.msrb.mxu0 %v2433_v23 }
  0xaa   : > { %1806 = vmatmul.msk.f32.vlgmr.msra.gmra.mxu1 %vm230_vm2, %v2185_v24 }
  0xab   : > { %565 = vmatpush.msra.mxu1 %v2262_v59 }
  0xad   : > { %566 = vmatpush.msra.mxu1 %v2274_v61 }
  0xaf   : > { %567 = vmatpush.msra.mxu1 %v2284_v63 }
  0xb1   : > { %568 = vmatpush.msra.mxu1 %v2302_v2 }
  0xb2   : > { %1811 = vmatmul.msk.f32.vlgmr.msrb.gmra.mxu1 %vm230_vm2, %v298_v19 }
  0xb3   : > { %569 = vmatpush.msra.mxu1 %v2320_v5 }
  0xb5   : > { %570 = vmatpush.msra.mxu1 %v2338_v10 }
  0xb7   : > { %571 = vmatpush.msra.mxu1 %v2356_v13 }
  0xb9   : > { %572 = vmatpush.msra.mxu1 %v2389_v17 }
  0xbb   : > { %758 = vmatpush.msrb.mxu1 %v2269_v60 }
  0xbd   : > { %759 = vmatpush.msrb.mxu1 %v2292_v0 }
  0xbf   : > { %760 = vmatpush.msrb.mxu1 %v2310_v3 }
  0xc1   : > { %761 = vmatpush.msrb.mxu1 %v2328_v6 }
  0xc3   : > { %762 = vmatpush.msrb.mxu1 %v2346_v11 }
  0xc5   : > { %763 = vmatpush.msrb.mxu1 %v2364_v14 }
  0xc7   : > { %764 = vmatpush.msrb.mxu1 %v2374_v16 }
  0xc9   : > { %765 = vmatpush.msrb.mxu1 %v2394_v18 }
 0x127   : > { %v2205_v29 = vpop.f32.mrf.mxu1 }
 0x128   : > { %v324_v30 = vadd.f32 %v323_v27, %v2205_v29  ;;  %v2441_v27 = vld [vmem:[%s3092_s1 + $0x178] sm:$0xff] }
 0x129   : > { %457 = vmatpush.msrb.mxu0 %v2441_v27 }
 0x12a   : > { %v326_v32 = vmax.f32 %v324_v30, 0.0  ;;  %v2449_v30 = vld [vmem:[%s3092_s1 + $0x170] sm:$0xff] }
 0x12b   : > { %458 = vmatpush.msrb.mxu0 %v2449_v30 }
 0x12c   : > { %v327_v34 = vadd.f32 1e-06, %v326_v32  ;;  %478 = vrot.lane.b32.xlu0 %v326_v32, %s2067_s27  ;;  %v2457_v32 = vld [vmem:[%s3092_s1 + $0x168] sm:$0xff] }
 0x12d   : > { %459 = vmatpush.msrb.mxu0 %v2457_v32 }
 0x12e   : > { %1900 = vlog2.f32 %v327_v34  ;;  %v2464_v34 = vld [vmem:[%s3092_s1 + $0x160] sm:$0xff] }
 0x12f   : > { %460 = vmatpush.msrb.mxu0 %v2464_v34 }
 0x131   : > { %610 = vmatpush.msra.mxu0 %v2246_v56 }
 0x133   : > { %611 = vmatpush.msra.mxu0 %v2251_v57 }
 0x134   : > { %v1901_v38 = vpop.eup %1900 }
 0x135   : > { %v329_v39 = vmul.f32 0.6931472, %v1901_v38  ;;  %612 = vmatpush.msra.mxu0 %v2257_v58 }
 0x137   : > { %v330_v40 = vmul.f32 -0.98, %v329_v39  ;;  %613 = vmatpush.msra.mxu0 %v2279_v62 }
 0x139   : > { %v331_v41 = vmul.f32 1.442695, %v330_v40  ;;  %614 = vmatpush.msra.mxu0 %v2297_v1  ;;  %v301_v40 = vld [vmem:[#allocation4 + $0x5] sm:$0x1] }
 0x13a   : > { %1813 = vmatmul.msk.f32.vlgmr.msrb.gmra.mxu0 %vm230_vm2, %v301_v40 }
 0x13b   : > { %1902 = vpow2.f32 %v331_v41  ;;  %615 = vmatpush.msra.mxu0 %v2315_v4  ;;  %v414_v41 = vpop.f32.mrf.mxu1 }
 0x13d   : > { %616 = vmatpush.msra.mxu0 %v2333_v7 }
 0x13f   : > { %617 = vmatpush.msra.mxu0 %v2351_v12 }
 0x141   : > { %v1903_v42 = vpop.eup %1902  ;;  %672 = vmatpush.msrb.mxu0 %v2141_v8 }
 0x142   : > { %v333_v43 = vmul.f32 %v1903_v42, %v2185_v24 }
 0x143   : > { %673 = vmatpush.msrb.mxu0 %v2146_v9 }
 0x144   : > { %v334_v44 = vadd.f32 2.0, %v333_v43  ;;  %v2515_v43 = vld [vmem:[%s3092_s1 + $0x1e0] sm:$0xff] }
 0x146   : > { %1904 = vrsqrt.f32 %v334_v44  ;;  %vm342_vm3 = vcmp.eq.f32.partialorder %v334_v44, inf  ;;  %v345_v52 = vand.u32 2147483648, %v334_v44  ;;  %vm344_vm4 = vcmp.eq.f32.partialorder %v334_v44, 0.0 }
 0x14c   : > { %v1905_v45 = vpop.eup %1904 }
 0x14d   : > { %v336_v46 = vmul.f32 %v1905_v45, %v334_v44 }
 0x14f   : > { %v337_v47 = vmul.f32 %v1905_v45, %v336_v46 }
 0x151   : > { %v338_v48 = vmul.f32 0.5, %v337_v47  ;;  %v481_v47 = vrot.slane %v2205_v29, 1 }
 0x153   : > { %v339_v49 = vsub.f32 1.5, %v338_v48 }
 0x155   : > { %v340_v50 = vmul.f32 %v1905_v45, %v339_v49 }
 0x157   : > { %v341_v51 = vmul.f32 %v340_v50, %v334_v44 }
 0x159   : > { %v343_v53 = vsel %vm342_vm3, %v334_v44, %v341_v51 }
 0x15a   : > { %v346_v54 = vsel %vm344_vm4, %v345_v52, %v343_v53 }
 0x15b   : > { %v1808_v55 = vadd.f32 -1.4142135, %v346_v54 }
 0x15d   : > { %1809 = vmatmul.msk.f32.vlgmr.msra.gmra.mxu3 %vm230_vm2, %v1808_v55 }
 0x15e   : > { %585 = vmatpush.msra.mxu3 %v2269_v60 }
 0x160   : > { %586 = vmatpush.msra.mxu3 %v2292_v0 }
 0x162   : > { %587 = vmatpush.msra.mxu3 %v2310_v3 }
 0x164   : > { %588 = vmatpush.msra.mxu3 %v2328_v6 }
 0x165   : > { %1812 = vmatmul.msk.f32.vlgmr.msrb.gmra.mxu3 %vm230_vm2, %v2366_v15 }
 0x166   : > { %589 = vmatpush.msra.mxu3 %v2346_v11 }
 0x168   : > { %590 = vmatpush.msra.mxu3 %v2364_v14 }
 0x16a   : > { %591 = vmatpush.msra.mxu3 %v2374_v16 }
 0x16c   : > { %592 = vmatpush.msra.mxu3 %v2394_v18 }
 0x16e   : > { %715 = vmatpush.msrb.mxu3 %v2192_v25 }
 0x170   : > { %716 = vmatpush.msrb.mxu3 %v2197_v26 }
 0x172   : > { %717 = vmatpush.msrb.mxu3 %v2203_v28 }
 0x174   : > { %718 = vmatpush.msrb.mxu3 %v2212_v31 }
 0x176   : > { %719 = vmatpush.msrb.mxu3 %v2218_v33 }
 0x178   : > { %720 = vmatpush.msrb.mxu3 %v2225_v35 }
 0x17a   : > { %721 = vmatpush.msrb.mxu3 %v2231_v36 }
 0x17c   : > { %722 = vmatpush.msrb.mxu3 %v2237_v37 }
 0x19e   : > { %v479_v39 = vpop.permute.xlu0 %478 }
 0x1e0   : > { %v368_v38 = vpop.f32.mrf.mxu3 }
 0x1e1   : > { %1810 = vmatmul.msk.f32.vlgmr.msrb.gmra.mxu2 %vm230_vm2, %v368_v38  ;;  %1818 = vmatmul.msk.f32.vlgmr.msra.gmra.mxu3 %vm230_vm2, %v368_v38 }
 0x1e2   : > { %542 = vmatpush.msrb.mxu2 %v2192_v25  ;;  %803 = vmatpush.msra.mxu3 %v2412_v20 }
 0x1e4   : > { %543 = vmatpush.msrb.mxu2 %v2197_v26  ;;  %804 = vmatpush.msra.mxu3 %v2417_v21 }
 0x1e6   : > { %544 = vmatpush.msrb.mxu2 %v2203_v28  ;;  %805 = vmatpush.msra.mxu3 %v2425_v22 }
 0x1e8   : > { %545 = vmatpush.msrb.mxu2 %v2212_v31  ;;  %806 = vmatpush.msra.mxu3 %v2433_v23 }
 0x1e9   : > { %1814 = vmatmul.msk.f32.vlgmr.msra.gmra.mxu2 %vm302_vm0, %v479_v39 }
 0x1ea   : > { %546 = vmatpush.msrb.mxu2 %v2218_v33  ;;  %807 = vmatpush.msra.mxu3 %v2441_v27 }
 0x1ec   : > { %547 = vmatpush.msrb.mxu2 %v2225_v35  ;;  %808 = vmatpush.msra.mxu3 %v2449_v30 }
 0x1ee   : > { %548 = vmatpush.msrb.mxu2 %v2231_v36  ;;  %809 = vmatpush.msra.mxu3 %v2457_v32 }
 0x1f0   : > { %549 = vmatpush.msrb.mxu2 %v2237_v37  ;;  %810 = vmatpush.msra.mxu3 %v2464_v34 }
 0x1f2   : > { %633 = vmatpush.msra.mxu2 %v2412_v20 }
 0x1f4   : > { %634 = vmatpush.msra.mxu2 %v2417_v21 }
 0x1f6   : > { %635 = vmatpush.msra.mxu2 %v2425_v22 }
 0x1f8   : > { %636 = vmatpush.msra.mxu2 %v2433_v23 }
 0x1fa   : > { %637 = vmatpush.msra.mxu2 %v2441_v27 }
 0x1fc   : > { %638 = vmatpush.msra.mxu2 %v2449_v30 }
 0x1fe   : > { %639 = vmatpush.msra.mxu2 %v2457_v32 }
 0x200   : > { %640 = vmatpush.msra.mxu2 %v2464_v34 }
 0x264   : > { %v391_v42 = vpop.f32.mrf.mxu2 }
 0x265   : > { %v415_v44 = vadd.f32 %v414_v41, %v391_v42 }
 0x267   : > { %v2518_v45 = vadd.f32 %v415_v44, %v2515_v43 }
 0x269   : > { %v3096_v46 = vmax.f32 %v2518_v45, 0.0 }
 0x26b   : > { %1819 = vmatmul.msk.f32.vlgmr.msra.gmra.mxu0 %vm230_vm2, %v3096_v46 }
 0x26c   : > { %v502_v48 = vpop.f32.mrf.mxu2  ;;  %738 = vmatpush.msra.mxu0 %v2262_v59 }
 0x26d   : > { %v503_v49 = vadd.f32 %v502_v48, %v481_v47 }
 0x26e   : > { %739 = vmatpush.msra.mxu0 %v2274_v61 }
 0x26f   : > { %v505_v50 = vmax.f32 %v503_v49, 0.0 }
 0x270   : > { %740 = vmatpush.msra.mxu0 %v2284_v63 }
 0x271   : > { %v506_v51 = vadd.f32 1e-06, %v505_v50  ;;  %652 = vrot.lane.b32.xlu0 %v505_v50, %s2067_s27 }
 0x272   : > { %741 = vmatpush.msra.mxu0 %v2302_v2 }
 0x273   : > { %1906 = vlog2.f32 %v506_v51 }
 0x274   : > { %742 = vmatpush.msra.mxu0 %v2320_v5 }
 0x276   : > { %743 = vmatpush.msra.mxu0 %v2338_v10 }
 0x278   : > { %744 = vmatpush.msra.mxu0 %v2356_v13 }
 0x279   : > { %v1907_v52 = vpop.eup %1906 }
 0x27a   : > { %v508_v53 = vmul.f32 0.6931472, %v1907_v52  ;;  %745 = vmatpush.msra.mxu0 %v2389_v17 }
 0x27c   : > { %v509_v54 = vmul.f32 -0.98, %v508_v53 }
 0x27e   : > { %v510_v55 = vmul.f32 1.442695, %v509_v54 }
 0x280   : > { %1908 = vpow2.f32 %v510_v55 }
 0x286   : > { %v1909_v19 = vpop.eup %1908 }
 0x287   : > { %v513_v38 = vrot.slane %v1909_v19, 7  ;;  %v300_v19 = vld [vmem:[#allocation4 + $0x4] sm:$0x1] }
 0x289   : > { %v515_v39 = vmul.f32 %v513_v38, %v2185_v24 }
 0x28b   : > { %v516_v40 = vadd.f32 2.0, %v515_v39 }
 0x28d   : > { %1910 = vrsqrt.f32 %v516_v40  ;;  %vm524_vm5 = vcmp.eq.f32.partialorder %v516_v40, inf  ;;  %v527_v51 = vand.u32 2147483648, %v516_v40  ;;  %vm526_vm6 = vcmp.eq.f32.partialorder %v516_v40, 0.0 }
 0x293   : > { %v1911_v41 = vpop.eup %1910 }
 0x294   : > { %v518_v42 = vmul.f32 %v1911_v41, %v516_v40 }
 0x296   : > { %v519_v44 = vmul.f32 %v1911_v41, %v518_v42  ;;  %v654_v42 = vrot.slane %v2205_v29, 2 }
 0x298   : > { %v520_v47 = vmul.f32 0.5, %v519_v44 }
 0x29a   : > { %v521_v48 = vsub.f32 1.5, %v520_v47 }
 0x29c   : > { %v522_v49 = vmul.f32 %v1911_v41, %v521_v48 }
 0x29e   : > { %v523_v50 = vmul.f32 %v522_v49, %v516_v40 }
 0x2a0   : > { %v525_v52 = vsel %vm524_vm5, %v516_v40, %v523_v50  ;;  %v2574_v40 = vpop.f32.mrf.mxu0  ;;  %vm1718_vm5 = vcmask 122880  }
 0x2a1   : > { %v528_v53 = vsel %vm526_vm6, %v527_v51, %v525_v52  ;;  %vm1671_vm6 = vcmask 7168  }
 0x2a2   : > { %v1815_v54 = vadd.f32 -1.4142135, %v528_v53 }
 0x2a4   : > { %v531_v55 = vrot.slane %v1815_v54, 1 }
 0x2a6   : > { %1816 = vmatmul.msk.f32.vlgmr.msrb.gmra.mxu2 %vm230_vm2, %v531_v55 }
 0x2a7   : > { %783 = vmatpush.msrb.mxu2 %v2246_v56 }
 0x2a9   : > { %784 = vmatpush.msrb.mxu2 %v2251_v57 }
 0x2ab   : > { %785 = vmatpush.msrb.mxu2 %v2257_v58 }
 0x2ad   : > { %786 = vmatpush.msrb.mxu2 %v2279_v62 }
 0x2ae   : > { %1820 = vmatmul.msk.f32.vlgmr.msra.gmra.mxu2 %vm230_vm2, %v300_v19 }
 0x2af   : > { %787 = vmatpush.msrb.mxu2 %v2297_v1 }
 0x2b1   : > { %788 = vmatpush.msrb.mxu2 %v2315_v4 }
 0x2b3   : > { %789 = vmatpush.msrb.mxu2 %v2333_v7 }
 0x2b5   : > { %790 = vmatpush.msrb.mxu2 %v2351_v12 }
 0x2b7   : > { %928 = vmatpush.msra.mxu2 %v2269_v60 }
 0x2b9   : > { %929 = vmatpush.msra.mxu2 %v2292_v0 }
 0x2bb   : > { %930 = vmatpush.msra.mxu2 %v2310_v3 }
 0x2bd   : > { %931 = vmatpush.msra.mxu2 %v2328_v6 }
 0x2bf   : > { %932 = vmatpush.msra.mxu2 %v2346_v11 }
 0x2c1   : > { %933 = vmatpush.msra.mxu2 %v2364_v14 }
 0x2c3   : > { %934 = vmatpush.msra.mxu2 %v2374_v16 }
 0x2c5   : > { %935 = vmatpush.msra.mxu2 %v2394_v18 }
 0x2e3   : > { %v653_v38 = vpop.permute.xlu0 %652 }
 0x2e4   : > { %1821 = vmatmul.msk.f32.vlgmr.msrb.gmra.mxu0 %vm302_vm0, %v653_v38 }
 0x2e5   : > { %842 = vmatpush.msrb.mxu0 %v2141_v8 }
 0x2e7   : > { %843 = vmatpush.msrb.mxu0 %v2146_v9 }
 0x2e8   : > { %v2576_v41 = vpop.f32.mrf.mxu0 }
 0x2e9   : > { %3102 = vst [vmem:[#allocation9_spill] sm:$0xff] %v2576_v41 }
 0x329   : > { %v551_v39 = vpop.f32.mrf.mxu2 }
 0x32a   : > { %1817 = vmatmul.msk.f32.vlgmr.msra.gmra.mxu1 %vm230_vm2, %v551_v39 }
 0x32b   : > { %885 = vmatpush.msra.mxu1 %v2192_v25 }
 0x32d   : > { %886 = vmatpush.msra.mxu1 %v2197_v26 }
 0x32f   : > { %887 = vmatpush.msra.mxu1 %v2203_v28 }
 0x331   : > { %888 = vmatpush.msra.mxu1 %v2212_v31 }
 0x332   : > { %1825 = vmatmul.msk.f32.vlgmr.msrb.gmra.mxu1 %vm230_vm2, %v551_v39 }
 0x333   : > { %889 = vmatpush.msra.mxu1 %v2218_v33 }
 0x335   : > { %890 = vmatpush.msra.mxu1 %v2225_v35 }
 0x337   : > { %891 = vmatpush.msra.mxu1 %v2231_v36 }
 0x339   : > { %892 = vmatpush.msra.mxu1 %v2237_v37 }
 0x33b   : > { %973 = vmatpush.msrb.mxu1 %v2412_v20 }
 0x33d   : > { %974 = vmatpush.msrb.mxu1 %v2417_v21 }
 0x33f   : > { %975 = vmatpush.msrb.mxu1 %v2425_v22 }
 0x341   : > { %976 = vmatpush.msrb.mxu1 %v2433_v23 }
 0x343   : > { %977 = vmatpush.msrb.mxu1 %v2441_v27 }
 0x345   : > { %978 = vmatpush.msrb.mxu1 %v2449_v30 }
 0x347   : > { %979 = vmatpush.msrb.mxu1 %v2457_v32 }
 0x349   : > { %980 = vmatpush.msrb.mxu1 %v2464_v34 }
 0x361   : > { %v675_v44 = vpop.f32.mrf.mxu0 }
 0x362   : > { %v676_v47 = vadd.f32 %v675_v44, %v654_v42 }
 0x364   : > { %v678_v48 = vmax.f32 %v676_v47, 0.0 }
 0x366   : > { %v679_v49 = vadd.f32 1e-06, %v678_v48  ;;  %822 = vrot.lane.b32.xlu1 %v678_v48, %s2067_s27 }
 0x368   : > { %1912 = vlog2.f32 %v679_v49 }
 0x36e   : > { %v1913_v50 = vpop.eup %1912 }
 0x36f   : > { %v681_v51 = vmul.f32 0.6931472, %v1913_v50 }
 0x371   : > { %v682_v52 = vmul.f32 -0.98, %v681_v51 }
 0x373   : > { %v683_v53 = vmul.f32 1.442695, %v682_v52 }
 0x375   : > { %1914 = vpow2.f32 %v683_v53  ;;  %v2583_v53 = vpop.f32.mrf.mxu3 }
 0x37b   : > { %v1915_v54 = vpop.eup %1914 }
 0x37c   : > { %v686_v55 = vrot.slane %v1915_v54, 6 }
 0x37e   : > { %v688_v19 = vmul.f32 %v686_v55, %v2185_v24 }
 0x380   : > { %v689_v38 = vadd.f32 2.0, %v688_v19 }
 0x382   : > { %1916 = vrsqrt.f32 %v689_v38  ;;  %vm697_vm7 = vcmp.eq.f32.partialorder %v689_v38, inf  ;;  %v700_v48 = vand.u32 2147483648, %v689_v38  ;;  %vm699_vm8 = vcmp.eq.f32.partialorder %v689_v38, 0.0 }
 0x388   : > { %v1917_v39 = vpop.eup %1916 }
 0x389   : > { %v691_v46 = vmul.f32 %v1917_v39, %v689_v38 }
 0x38b   : > { %v692_v41 = vmul.f32 %v1917_v39, %v691_v46 }
 0x38d   : > { %v693_v42 = vmul.f32 0.5, %v692_v41 }
 0x38f   : > { %v694_v44 = vsub.f32 1.5, %v693_v42 }
 0x391   : > { %v695_v47 = vmul.f32 %v1917_v39, %v694_v44 }
 0x393   : > { %v696_v18 = vmul.f32 %v695_v47, %v689_v38 }
 0x395   : > { %v698_v49 = vsel %vm697_vm7, %v689_v38, %v696_v18  ;;  %v594_v18 = vpop.f32.mrf.mxu3  ;;  %vm1673_vm7 = vcmask 15360  }
 0x396   : > { %v701_v50 = vsel %vm699_vm8, %v700_v48, %v698_v49  ;;  %v824_v48 = vrot.slane %v2205_v29, 3  ;;  %vm1675_vm8 = vcmask 23552  }
 0x397   : > { %v1822_v51 = vadd.f32 -1.4142135, %v701_v50 }
 0x399   : > { %v704_v52 = vrot.slane %v1822_v51, 2 }
 0x39b   : > { %1823 = vmatmul.msk.f32.vlgmr.msrb.gmra.mxu3 %vm230_vm2, %v704_v52 }
 0x39c   : > { %953 = vmatpush.msrb.mxu3 %v2246_v56 }
 0x39e   : > { %954 = vmatpush.msrb.mxu3 %v2251_v57 }
 0x3a0   : > { %955 = vmatpush.msrb.mxu3 %v2257_v58 }
 0x3a2   : > { %956 = vmatpush.msrb.mxu3 %v2279_v62 }
 0x3a3   : > { %1827 = vmatmul.msk.f32.vlgmr.msra.gmra.mxu3 %vm230_vm2, %v2366_v15 }
 0x3a4   : > { %957 = vmatpush.msrb.mxu3 %v2297_v1 }
 0x3a6   : > { %958 = vmatpush.msrb.mxu3 %v2315_v4 }
 0x3a7   : > { %v574_v46 = vpop.f32.mrf.mxu1 }
 0x3a8   : > { %v595_v41 = vadd.f32 %v594_v18, %v574_v46  ;;  %959 = vmatpush.msrb.mxu3 %v2333_v7 }
 0x3aa   : > { %v2594_v54 = vadd.f32 %v595_v41, %v2515_v43  ;;  %960 = vmatpush.msrb.mxu3 %v2351_v12 }
 0x3ac   : > { %1078 = vmatpush.msra.mxu3 %v2262_v59  ;;  %v3100_v55 = vmax.f32 %v2594_v54, 0.0 }
 0x3ae   : > { %1079 = vmatpush.msra.mxu3 %v2274_v61  ;;  %1826 = vmatmul.msk.f32.vlgmr.msrb.gmra.mxu2 %vm230_vm2, %v3100_v55 }
 0x3af   : > { %1055 = vmatpush.msrb.mxu2 %v2192_v25  ;;  %v767_v38 = vpop.f32.mrf.mxu1 }
 0x3b0   : > { %1080 = vmatpush.msra.mxu3 %v2284_v63 }
 0x3b1   : > { %1056 = vmatpush.msrb.mxu2 %v2197_v26 }
 0x3b2   : > { %1081 = vmatpush.msra.mxu3 %v2302_v2 }
 0x3b3   : > { %1057 = vmatpush.msrb.mxu2 %v2203_v28 }
 0x3b4   : > { %1082 = vmatpush.msra.mxu3 %v2320_v5 }
 0x3b5   : > { %1058 = vmatpush.msrb.mxu2 %v2212_v31 }
 0x3b6   : > { %1083 = vmatpush.msra.mxu3 %v2338_v10 }
 0x3b7   : > { %1059 = vmatpush.msrb.mxu2 %v2218_v33 }
 0x3b8   : > { %1084 = vmatpush.msra.mxu3 %v2356_v13 }
 0x3b9   : > { %1060 = vmatpush.msrb.mxu2 %v2225_v35 }
 0x3ba   : > { %1085 = vmatpush.msra.mxu3 %v2389_v17 }
 0x3bb   : > { %1061 = vmatpush.msrb.mxu2 %v2231_v36 }
 0x3bd   : > { %1062 = vmatpush.msrb.mxu2 %v2237_v37 }
 0x3d8   : > { %v823_v19 = vpop.permute.xlu1 %822 }
 0x41e   : > { %v724_v15 = vpop.f32.mrf.mxu3 }
 0x41f   : > { %1824 = vmatmul.msk.f32.vlgmr.msra.gmra.mxu0 %vm230_vm2, %v724_v15  ;;  %1832 = vmatmul.msk.f32.vlgmr.msra.gmra.mxu2 %vm230_vm2, %v724_v15 }
 0x420   : > { %908 = vmatpush.msra.mxu0 %v2262_v59  ;;  %1143 = vmatpush.msra.mxu2 %v2412_v20 }
 0x422   : > { %909 = vmatpush.msra.mxu0 %v2274_v61  ;;  %1144 = vmatpush.msra.mxu2 %v2417_v21 }
 0x424   : > { %910 = vmatpush.msra.mxu0 %v2284_v63  ;;  %1145 = vmatpush.msra.mxu2 %v2425_v22 }
 0x426   : > { %911 = vmatpush.msra.mxu0 %v2302_v2  ;;  %1146 = vmatpush.msra.mxu2 %v2433_v23 }
 0x427   : > { %1828 = vmatmul.msk.f32.vlgmr.msrb.gmra.mxu0 %vm302_vm0, %v823_v19 }
 0x428   : > { %912 = vmatpush.msra.mxu0 %v2320_v5  ;;  %1147 = vmatpush.msra.mxu2 %v2441_v27 }
 0x42a   : > { %913 = vmatpush.msra.mxu0 %v2338_v10  ;;  %1148 = vmatpush.msra.mxu2 %v2449_v30 }
 0x42c   : > { %914 = vmatpush.msra.mxu0 %v2356_v13  ;;  %1149 = vmatpush.msra.mxu2 %v2457_v32 }
 0x42e   : > { %915 = vmatpush.msra.mxu0 %v2389_v17  ;;  %1150 = vmatpush.msra.mxu2 %v2464_v34 }
 0x430   : > { %1012 = vmatpush.msrb.mxu0 %v2141_v8 }
 0x432   : > { %1013 = vmatpush.msrb.mxu0 %v2146_v9 }
 0x49c   : > { %v747_v39 = vpop.f32.mrf.mxu0 }
 0x49d   : > { %v768_v42 = vadd.f32 %v767_v38, %v747_v39 }
 0x49f   : > { %v2639_v44 = vadd.f32 %v768_v42, %v2515_v43  ;;  %v463_v42 = vadd.f32 %v2574_v40, %v2583_v53 }
 0x4a1   : > { %v3099_v47 = vmax.f32 %v2639_v44, 0.0 }
 0x4a3   : > { %1833 = vmatmul.msk.f32.vlgmr.msrb.gmra.mxu3 %vm230_vm2, %v3099_v47 }
 0x4a4   : > { %v845_v49 = vpop.f32.mrf.mxu0  ;;  %1182 = vmatpush.msrb.mxu3 %v2141_v8 }
 0x4a5   : > { %v846_v50 = vadd.f32 %v845_v49, %v824_v48 }
 0x4a6   : > { %1183 = vmatpush.msrb.mxu3 %v2146_v9  ;;  %v2653_v9 = vrot.slane %v2515_v43, 1 }
 0x4a7   : > { %v848_v51 = vmax.f32 %v846_v50, 0.0 }
 0x4a8   : > { %v468_v49 = vadd.f32 %v2653_v9, %v463_v42 }
 0x4a9   : > { %v849_v52 = vadd.f32 1e-06, %v848_v51  ;;  %992 = vrot.lane.b32.xlu1 %v848_v51, %s2067_s27 }
 0x4aa   : > { %v469_v50 = vmax.f32 %v468_v49, 0.0 }
 0x4ab   : > { %1918 = vlog2.f32 %v849_v52  ;;  %v2657_v52 = vrot.slane %v2515_v43, 2 }
 0x4b1   : > { %v1919_v18 = vpop.eup %1918 }
 0x4b2   : > { %v851_v46 = vmul.f32 0.6931472, %v1919_v18 }
 0x4b4   : > { %v852_v41 = vmul.f32 -0.98, %v851_v46  ;;  %v472_v46 = vmul.f32 %v2657_v52, %v469_v50  ;;  %v3103_v50 = vmax.f32 %v2518_v45, 0.0 }
 0x4b6   : > { %v853_v15 = vmul.f32 1.442695, %v852_v41  ;;  %v474_v40 = vsel %vm473_vm9, %v472_v46, 0.0 }
 0x4b8   : > { %1920 = vpow2.f32 %v853_v15 }
 0x4be   : > { %v1921_v19 = vpop.eup %1920 }
 0x4bf   : > { %v856_v38 = vrot.slane %v1921_v19, 5 }
 0x4c1   : > { %v858_v39 = vmul.f32 %v856_v38, %v2185_v24 }
 0x4c3   : > { %v859_v48 = vadd.f32 2.0, %v858_v39 }
 0x4c5   : > { %1922 = vrsqrt.f32 %v859_v48  ;;  %vm867_vm10 = vcmp.eq.f32.partialorder %v859_v48, inf  ;;  %v870_v39 = vand.u32 2147483648, %v859_v48  ;;  %vm869_vm11 = vcmp.eq.f32.partialorder %v859_v48, 0.0 }
 0x4cb   : > { %v1923_v51 = vpop.eup %1922 }
 0x4cc   : > { %v861_v18 = vmul.f32 %v1923_v51, %v859_v48 }
 0x4ce   : > { %v862_v41 = vmul.f32 %v1923_v51, %v861_v18  ;;  %v2724_v18 = vld [vmem:[%s3092_s1 + $0x50] sm:$0xff] }
 0x4d0   : > { %v863_v15 = vmul.f32 0.5, %v862_v41 }
 0x4d2   : > { %v864_v53 = vsub.f32 1.5, %v863_v15 }
 0x4d3   : > { %475 = vadd.xlane.f32.xlu1 %v474_v40 }
 0x4d4   : > { %v865_v19 = vmul.f32 %v1923_v51, %v864_v53 }
 0x4d6   : > { %v866_v38 = vmul.f32 %v865_v19, %v859_v48 }
 0x4d8   : > { %v868_v42 = vsel %vm867_vm10, %v859_v48, %v866_v38  ;;  %vm1679_vm10 = vcmask 39936  }
 0x4d9   : > { %v871_v49 = vsel %vm869_vm11, %v870_v39, %v868_v42  ;;  %vm1681_vm11 = vcmask 48128  }
 0x4da   : > { %v1829_v47 = vadd.f32 -1.4142135, %v871_v49 }
 0x4dc   : > { %v874_v55 = vrot.slane %v1829_v47, 3  ;;  %v3104_v47 = vld [vmem:[#allocation8_spill] sm:$0xff] }
 0x4de   : > { %1830 = vmatmul.msk.f32.vlgmr.msra.gmra.mxu1 %vm230_vm2, %v874_v55 }
 0x4df   : > { %1123 = vmatpush.msra.mxu1 %v2246_v56 }
 0x4e1   : > { %1124 = vmatpush.msra.mxu1 %v2251_v57 }
 0x4e3   : > { %1125 = vmatpush.msra.mxu1 %v2257_v58 }
 0x4e5   : > { %1126 = vmatpush.msra.mxu1 %v2279_v62 }
 0x4e6   : > { %1834 = vmatmul.msk.f32.vlgmr.msrb.gmra.mxu1 %vm230_vm2, %v3103_v50 }
 0x4e7   : > { %1127 = vmatpush.msra.mxu1 %v2297_v1 }
 0x4e9   : > { %1128 = vmatpush.msra.mxu1 %v2315_v4 }
 0x4eb   : > { %1129 = vmatpush.msra.mxu1 %v2333_v7 }
 0x4ed   : > { %1130 = vmatpush.msra.mxu1 %v2351_v12 }
 0x4ef   : > { %1248 = vmatpush.msrb.mxu1 %v2262_v59 }
 0x4f1   : > { %1249 = vmatpush.msrb.mxu1 %v2274_v61 }
 0x4f3   : > { %1250 = vmatpush.msrb.mxu1 %v2284_v63 }
 0x4f5   : > { %1251 = vmatpush.msrb.mxu1 %v2302_v2 }
 0x4f7   : > { %1252 = vmatpush.msrb.mxu1 %v2320_v5 }
 0x4f9   : > { %1253 = vmatpush.msrb.mxu1 %v2338_v10 }
 0x4fb   : > { %1254 = vmatpush.msrb.mxu1 %v2356_v13 }
 0x4fd   : > { %1255 = vmatpush.msrb.mxu1 %v2389_v17 }
 0x51b   : > { %v993_v55 = vpop.permute.xlu1 %992 }
 0x55b   : > { %v894_v45 = vpop.f32.mrf.mxu1 }
 0x55c   : > { %1831 = vmatmul.msk.f32.vlgmr.msra.gmra.mxu0 %vm230_vm2, %v894_v45 }
 0x55d   : > { %1098 = vmatpush.msra.mxu0 %v2269_v60 }
 0x55f   : > { %1099 = vmatpush.msra.mxu0 %v2292_v0 }
 0x561   : > { %1100 = vmatpush.msra.mxu0 %v2310_v3 }
 0x563   : > { %1101 = vmatpush.msra.mxu0 %v2328_v6 }
 0x564   : > { %1835 = vmatmul.msk.f32.vlgmr.msrb.gmra.mxu0 %vm302_vm0, %v993_v55 }
 0x565   : > { %1102 = vmatpush.msra.mxu0 %v2346_v11 }
 0x567   : > { %1103 = vmatpush.msra.mxu0 %v2364_v14 }
 0x569   : > { %1104 = vmatpush.msra.mxu0 %v2374_v16 }
 0x56b   : > { %1105 = vmatpush.msra.mxu0 %v3104_v47 }
 0x56c   : > { %1839 = vmatmul.msk.f32.vlgmr.msra.gmra.mxu0 %vm230_vm2, %v894_v45 }
 0x56d   : > { %1225 = vmatpush.msrb.mxu0 %v2192_v25  ;;  %v2708_v25 = vpop.f32.mrf.mxu2 }
 0x56f   : > { %1226 = vmatpush.msrb.mxu0 %v2197_v26 }
 0x571   : > { %1227 = vmatpush.msrb.mxu0 %v2203_v28 }
 0x573   : > { %1228 = vmatpush.msrb.mxu0 %v2212_v31 }
 0x575   : > { %1229 = vmatpush.msrb.mxu0 %v2218_v33  ;;  %v2710_v26 = vpop.f32.mrf.mxu2 }
 0x577   : > { %1230 = vmatpush.msrb.mxu0 %v2225_v35 }
 0x579   : > { %1231 = vmatpush.msrb.mxu0 %v2231_v36 }
 0x57b   : > { %1232 = vmatpush.msrb.mxu0 %v2237_v37  ;;  %v994_v37 = vrot.slane %v2205_v29, 4 }
 0x57d   : > { %1313 = vmatpush.msra.mxu0 %v2412_v20  ;;  %v937_v28 = vpop.f32.mrf.mxu2 }
 0x57f   : > { %1314 = vmatpush.msra.mxu0 %v2417_v21 }
 0x581   : > { %1315 = vmatpush.msra.mxu0 %v2425_v22 }
 0x583   : > { %1316 = vmatpush.msra.mxu0 %v2433_v23 }
 0x585   : > { %1317 = vmatpush.msra.mxu0 %v2441_v27 }
 0x587   : > { %1318 = vmatpush.msra.mxu0 %v2449_v30 }
 0x589   : > { %1319 = vmatpush.msra.mxu0 %v2457_v32 }
 0x58b   : > { %1320 = vmatpush.msra.mxu0 %v2464_v34 }
 0x5d9   : > { %v917_v31 = vpop.f32.mrf.mxu0 }
 0x5da   : > { %v938_v33 = vadd.f32 %v937_v28, %v917_v31 }
 0x5dc   : > { %v2713_v35 = vadd.f32 %v938_v33, %v2515_v43 }
 0x5de   : > { %v941_v36 = vmax.f32 %v2713_v35, 0.0 }
 0x5e0   : > { %1840 = vmatmul.msk.f32.vlgmr.msra.gmra.mxu1 %vm230_vm2, %v941_v36 }
 0x5e1   : > { %v1015_v48 = vpop.f32.mrf.mxu0  ;;  %1352 = vmatpush.msra.mxu1 %v2141_v8 }
 0x5e2   : > { %v1016_v51 = vadd.f32 %v1015_v48, %v994_v37 }
 0x5e3   : > { %1353 = vmatpush.msra.mxu1 %v2724_v18 }
 0x5e4   : > { %v1018_v46 = vmax.f32 %v1016_v51, 0.0 }
 0x5e6   : > { %v1019_v41 = vadd.f32 1e-06, %v1018_v46  ;;  %1162 = vrot.lane.b32.xlu2 %v1018_v46, %s2067_s27 }
 0x5e8   : > { %1924 = vlog2.f32 %v1019_v41 }
 0x5ee   : > { %v1925_v15 = vpop.eup %1924 }
 0x5ef   : > { %v1021_v40 = vmul.f32 0.6931472, %v1925_v15  ;;  %v3105_v15 = vmax.f32 %v2594_v54, 0.0 }
 0x5f1   : > { %v1022_v53 = vmul.f32 -0.98, %v1021_v40 }
 0x5f3   : > { %v1023_v19 = vmul.f32 1.442695, %v1022_v53 }
 0x5f5   : > { %1926 = vpow2.f32 %v1023_v19 }
 0x5fb   : > { %v1927_v38 = vpop.eup %1926 }
 0x5fc   : > { %v1026_v8 = vrot.slane %v1927_v38, 4 }
 0x5fe   : > { %v1028_v39 = vmul.f32 %v1026_v8, %v2185_v24  ;;  %v3106_v8 = vld [vmem:[#allocation9_spill] sm:$0xff] }
 0x600   : > { %v1029_v42 = vadd.f32 2.0, %v1028_v39  ;;  %v643_v39 = vadd.f32 %v2708_v25, %v3106_v8 }
 0x602   : > { %1928 = vrsqrt.f32 %v1029_v42  ;;  %vm1037_vm12 = vcmp.eq.f32.partialorder %v1029_v42, inf  ;;  %v1040_v37 = vand.u32 2147483648, %v1029_v42  ;;  %vm1039_vm13 = vcmp.eq.f32.partialorder %v1029_v42, 0.0 }
 0x608   : > { %v1929_v49 = vpop.eup %1928 }
 0x609   : > { %v1031_v50 = vmul.f32 %v1929_v49, %v1029_v42 }
 0x60b   : > { %v1032_v45 = vmul.f32 %v1929_v49, %v1031_v50 }
 0x60d   : > { %v1033_v55 = vmul.f32 0.5, %v1032_v45 }
 0x60f   : > { %v1034_v28 = vsub.f32 1.5, %v1033_v55 }
 0x611   : > { %v1035_v31 = vmul.f32 %v1929_v49, %v1034_v28 }
 0x613   : > { %v1036_v33 = vmul.f32 %v1035_v31, %v1029_v42 }
 0x615   : > { %v1038_v48 = vsel %vm1037_vm12, %v1029_v42, %v1036_v33  ;;  %vm1683_vm12 = vcmask 56320  }
 0x616   : > { %v1041_v51 = vsel %vm1039_vm13, %v1040_v37, %v1038_v48 }
 0x617   : > { %v1836_v46 = vadd.f32 -1.4142135, %v1041_v51 }
 0x619   : > { %v1044_v41 = vrot.slane %v1836_v46, 4 }
 0x61b   : > { %1837 = vmatmul.msk.f32.vlgmr.msrb.gmra.mxu2 %vm230_vm2, %v1044_v41 }
 0x61c   : > { %1293 = vmatpush.msrb.mxu2 %v2246_v56  ;;  %v2749_v56 = vpop.f32.mrf.mxu1 }
 0x61e   : > { %1294 = vmatpush.msrb.mxu2 %v2251_v57 }
 0x620   : > { %1295 = vmatpush.msrb.mxu2 %v2257_v58 }
 0x622   : > { %1296 = vmatpush.msrb.mxu2 %v2279_v62 }
 0x623   : > { %1841 = vmatmul.msk.f32.vlgmr.msra.gmra.mxu2 %vm230_vm2, %v3105_v15 }
 0x624   : > { %1297 = vmatpush.msrb.mxu2 %v2297_v1 }
 0x626   : > { %1298 = vmatpush.msrb.mxu2 %v2315_v4  ;;  %v2780_v4 = vld [vmem:[%s3092_s1 + $0xc8] sm:$0xff] }
 0x628   : > { %1299 = vmatpush.msrb.mxu2 %v2333_v7  ;;  %v2798_v7 = vld [vmem:[%s3092_s1 + $0xb0] sm:$0xff] }
 0x62a   : > { %1300 = vmatpush.msrb.mxu2 %v2351_v12  ;;  %v2821_v12 = vpop.f32.mrf.mxu3 }
 0x62c   : > { %1418 = vmatpush.msra.mxu2 %v2262_v59 }
 0x62e   : > { %1419 = vmatpush.msra.mxu2 %v2274_v61 }
 0x630   : > { %1420 = vmatpush.msra.mxu2 %v2284_v63 }
 0x632   : > { %1421 = vmatpush.msra.mxu2 %v2302_v2  ;;  %v2768_v2 = vld [vmem:[%s3092_s1 + $0xd8] sm:$0xff] }
 0x634   : > { %1422 = vmatpush.msra.mxu2 %v2320_v5  ;;  %v2786_v5 = vld [vmem:[%s3092_s1 + $0xc0] sm:$0xff] }
 0x636   : > { %1423 = vmatpush.msra.mxu2 %v2338_v10  ;;  %v2804_v10 = vld [vmem:[%s3092_s1 + $0xa8] sm:$0xff] }
 0x638   : > { %1424 = vmatpush.msra.mxu2 %v2356_v13  ;;  %v962_v13 = vpop.f32.mrf.mxu3 }
 0x639   : > { %v983_v45 = vadd.f32 %v2749_v56, %v962_v13  ;;  %v2868_v13 = vld [vmem:[%s3092_s1 + $0x1c0] sm:$0xff] }
 0x63a   : > { %1425 = vmatpush.msra.mxu2 %v2389_v17 }
 0x63b   : > { %v985_v31 = vadd.f32 %v983_v45, %v2653_v9 }
 0x63d   : > { %v986_v51 = vmax.f32 %v985_v31, 0.0  ;;  %v2964_v31 = vld [vmem:[%s3092_s1 + $0xe8] sm:$0xff] }
 0x63f   : > { %v987_v15 = vmul.f32 %v986_v51, %v2657_v52  ;;  %v1986_v51 = vld [vmem:[%s3092_s1 + $0x198] sm:$0xff] }
 0x640   : > { %v1163_v58 = vpop.permute.xlu2 %1162 }
 0x65d   : > { %v1132_v59 = vpop.f32.mrf.mxu1 }
 0x69e   : > { %v1064_v57 = vpop.f32.mrf.mxu2 }
 0x69f   : > { %1838 = vmatmul.msk.f32.vlgmr.msra.gmra.mxu3 %vm230_vm2, %v1064_v57 }
 0x6a0   : > { %1268 = vmatpush.msra.mxu3 %v2269_v60 }
 0x6a2   : > { %1269 = vmatpush.msra.mxu3 %v2292_v0 }
 0x6a4   : > { %1270 = vmatpush.msra.mxu3 %v2310_v3  ;;  %v2774_v3 = vld [vmem:[%s3092_s1 + $0xd0] sm:$0xff] }
 0x6a6   : > { %v1152_v61 = vpop.f32.mrf.mxu2  ;;  %1271 = vmatpush.msra.mxu3 %v2328_v6  ;;  %v2792_v6 = vld [vmem:[%s3092_s1 + $0xb8] sm:$0xff] }
 0x6a7   : > { %v1153_v62 = vadd.f32 %v1152_v61, %v1132_v59  ;;  %1842 = vmatmul.msk.f32.vlgmr.msrb.gmra.mxu3 %vm302_vm0, %v1163_v58  ;;  %v988_v59 = vsel %vm473_vm9, %v987_v15, 0.0 }
 0x6a8   : > { %1272 = vmatpush.msra.mxu3 %v2346_v11  ;;  %v2810_v11 = vld [vmem:[%s3092_s1 + $0xa0] sm:$0xff] }
 0x6a9   : > { %v1155_v63 = vadd.f32 %v1153_v62, %v2653_v9 }
 0x6aa   : > { %1273 = vmatpush.msra.mxu3 %v2364_v14  ;;  %v1107_v14 = vpop.f32.mrf.mxu0 }
 0x6ab   : > { %v1156_v1 = vmax.f32 %v1155_v63, 0.0 }
 0x6ac   : > { %1274 = vmatpush.msra.mxu3 %v2374_v16 }
 0x6ad   : > { %v1157_v60 = vmul.f32 %v1156_v1, %v2657_v52  ;;  %v2850_v1 = vld [vmem:[%s3092_s1 + $0x1d8] sm:$0xff] }
 0x6ae   : > { %1275 = vmatpush.msra.mxu3 %v3104_v47 }
 0x6af   : > { %1846 = vmatmul.msk.f32.vlgmr.msra.gmra.mxu3 %vm230_vm2, %v1064_v57  ;;  %v1158_v0 = vsel %vm473_vm9, %v1157_v60, 0.0  ;;  %v2856_v60 = vld [vmem:[%s3092_s1 + $0x1d0] sm:$0xff] }
 0x6b0   : > { %1159 = vadd.xlane.f32.xlu1 %v1158_v0  ;;  %1395 = vmatpush.msrb.mxu3 %v2768_v2  ;;  %v2862_v0 = vld [vmem:[%s3092_s1 + $0x1c8] sm:$0xff] }
 0x6b2   : > { %1396 = vmatpush.msrb.mxu3 %v2774_v3 }
 0x6b4   : > { %1397 = vmatpush.msrb.mxu3 %v2780_v4 }
 0x6b6   : > { %1398 = vmatpush.msrb.mxu3 %v2786_v5 }
 0x6b8   : > { %1399 = vmatpush.msrb.mxu3 %v2792_v6 }
 0x6ba   : > { %1400 = vmatpush.msrb.mxu3 %v2798_v7 }
 0x6bc   : > { %1401 = vmatpush.msrb.mxu3 %v2804_v10 }
 0x6be   : > { %1402 = vmatpush.msrb.mxu3 %v2810_v11 }
 0x6c0   : > { %1483 = vmatpush.msra.mxu3 %v2412_v20 }
 0x6c2   : > { %1484 = vmatpush.msra.mxu3 %v2417_v21 }
 0x6c4   : > { %1485 = vmatpush.msra.mxu3 %v2425_v22  ;;  %v1164_v22 = vrot.slane %v2205_v29, 5 }
 0x6c6   : > { %1486 = vmatpush.msra.mxu3 %v2433_v23 }
 0x6c8   : > { %1487 = vmatpush.msra.mxu3 %v2441_v27  ;;  %v1961_v27 = vld [vmem:[%s3092_s1 + $0x58] sm:$0xff] }
 0x6ca   : > { %1488 = vmatpush.msra.mxu3 %v2449_v30 }
 0x6cc   : > { %1489 = vmatpush.msra.mxu3 %v2457_v32 }
 0x6ce   : > { %1490 = vmatpush.msra.mxu3 %v2464_v34 }
 0x722   : > { %v1087_v16 = vpop.f32.mrf.mxu3 }
 0x723   : > { %v1108_v17 = vadd.f32 %v1107_v14, %v1087_v16  ;;  %v3107_v14 = vmax.f32 %v2639_v44, 0.0  ;;  %v2877_v16 = vld [vmem:[%s3092_s1 + $0x1b8] sm:$0xff]  ;;  %v2889_v44 = vld [vmem:[%s3092_s1 + $0x1a8] sm:$0xff] }
 0x725   : > { %v1110_v20 = vadd.f32 %v1108_v17, %v2515_v43  ;;  %v2883_v17 = vld [vmem:[%s3092_s1 + $0x1b0] sm:$0xff] }
 0x727   : > { %v2824_v21 = vmax.f32 %v1110_v20, 0.0  ;;  %v2895_v20 = vld [vmem:[%s3092_s1 + $0x1a0] sm:$0xff] }
 0x729   : > { %1725 = vst.msk [vmem:[#allocation4 + $0x6] sm:$0x1] %vm473_vm9, %v2824_v21  ;;  %1847 = vmatmul.msk.f32.vlgmr.msrb.gmra.mxu2 %vm230_vm2, %v2824_v21 }
 0x72a   : > { %v1185_v23 = vpop.f32.mrf.mxu3  ;;  %1522 = vmatpush.msrb.mxu2 %v1961_v27  ;;  %v1972_v27 = vld [vmem:[%s3092_s1 + $0x148] sm:$0xff] }
 0x72b   : > { %v1186_v30 = vadd.f32 %v1185_v23, %v1164_v22  ;;  %v1970_v22 = vld [vmem:[%s3092_s1 + $0x158] sm:$0xff]  ;;  %v1971_v23 = vld [vmem:[%s3092_s1 + $0x150] sm:$0xff] }
 0x72c   : > { %1523 = vmatpush.msrb.mxu2 %v2724_v18  ;;  %v645_v18 = vadd.f32 %v643_v39, %v2653_v9 }
 0x72d   : > { %v1188_v32 = vmax.f32 %v1186_v30, 0.0  ;;  %v1973_v30 = vld [vmem:[%s3092_s1 + $0x140] sm:$0xff] }
 0x72e   : > { %v646_v50 = vmax.f32 %v645_v18, 0.0 }
 0x72f   : > { %v1189_v34 = vadd.f32 1e-06, %v1188_v32  ;;  %1332 = vrot.lane.b32.xlu2 %v1188_v32, %s2067_s27  ;;  %v1974_v32 = vld [vmem:[%s3092_s1 + $0x138] sm:$0xff] }
 0x730   : > { %v647_v33 = vmul.f32 %v646_v50, %v2657_v52  ;;  %v2951_v50 = vld [vmem:[%s3092_s1 + $0xf8] sm:$0xff] }
 0x731   : > { %1930 = vlog2.f32 %v1189_v34  ;;  %v1975_v34 = vld [vmem:[%s3092_s1 + $0x130] sm:$0xff] }
 0x732   : > { %v648_v25 = vsel %vm473_vm9, %v647_v33, 0.0 }
 0x737   : > { %v1931_v54 = vpop.eup %1930 }
 0x738   : > { %v1191_v47 = vmul.f32 0.6931472, %v1931_v54  ;;  %v1976_v54 = vld [vmem:[%s3092_s1 + $0x128] sm:$0xff] }
 0x73a   : > { %v1192_v40 = vmul.f32 -0.98, %v1191_v47  ;;  %v1977_v47 = vld [vmem:[%s3092_s1 + $0x120] sm:$0xff] }
 0x73c   : > { %v1193_v53 = vmul.f32 1.442695, %v1192_v40 }
 0x73e   : > { %1932 = vpow2.f32 %v1193_v53  ;;  %v2926_v53 = vld [vmem:[%s3092_s1 + $0x118] sm:$0xff] }
 0x744   : > { %v1933_v19 = vpop.eup %1932 }
 0x745   : > { %v1196_v38 = vrot.slane %v1933_v19, 3  ;;  %v2932_v19 = vld [vmem:[%s3092_s1 + $0x110] sm:$0xff] }
 0x747   : > { %v1198_v42 = vmul.f32 %v1196_v38, %v2185_v24  ;;  %v2938_v38 = vld [vmem:[%s3092_s1 + $0x108] sm:$0xff] }
 0x749   : > { %v1199_v49 = vadd.f32 2.0, %v1198_v42 }
 0x74b   : > { %1934 = vrsqrt.f32 %v1199_v49  ;;  %vm1207_vm14 = vcmp.eq.f32.partialorder %v1199_v49, inf  ;;  %v1210_v58 = vand.u32 2147483648, %v1199_v49  ;;  %vm1209_vm15 = vcmp.eq.f32.partialorder %v1199_v49, 0.0 }
 0x751   : > { %v1935_v55 = vpop.eup %1934 }
 0x752   : > { %v1201_v28 = vmul.f32 %v1935_v55, %v1199_v49 }
 0x754   : > { %v1202_v37 = vmul.f32 %v1935_v55, %v1201_v28 }
 0x756   : > { %v1203_v48 = vmul.f32 0.5, %v1202_v37  ;;  %v2971_v37 = vld [vmem:[%s3092_s1 + $0xe0] sm:$0xff] }
 0x758   : > { %649 = vadd.xlane.f32.xlu2 %v648_v25  ;;  %v1204_v46 = vsub.f32 1.5, %v1203_v48 }
 0x75a   : > { %v1205_v41 = vmul.f32 %v1935_v55, %v1204_v46  ;;  %v2958_v55 = vld [vmem:[%s3092_s1 + $0xf0] sm:$0xff] }
 0x75c   : > { %v1206_v57 = vmul.f32 %v1205_v41, %v1199_v49 }
 0x75e   : > { %v1208_v56 = vsel %vm1207_vm14, %v1199_v49, %v1206_v57  ;;  %v2944_v49 = vld [vmem:[%s3092_s1 + $0x100] sm:$0xff]  ;;  %v1334_v57 = vrot.slane %v2205_v29, 6 }
 0x75f   : > { %v1211_v61 = vsel %vm1209_vm15, %v1210_v58, %v1208_v56  ;;  %vm1710_vm15 = vcmask 64512  }
 0x760   : > { %989 = vadd.xlane.f32.xlu2 %v988_v59  ;;  %v1843_v62 = vadd.f32 -1.4142135, %v1211_v61 }
 0x762   : > { %v1214_v63 = vrot.slane %v1843_v62, 5 }
 0x764   : > { %1844 = vmatmul.msk.f32.vlgmr.msrb.gmra.mxu0 %vm230_vm2, %v1214_v63 }
 0x765   : > { %1463 = vmatpush.msrb.mxu0 %v2850_v1 }
 0x767   : > { %1464 = vmatpush.msrb.mxu0 %v2856_v60 }
 0x769   : > { %1465 = vmatpush.msrb.mxu0 %v2862_v0 }
 0x76b   : > { %1466 = vmatpush.msrb.mxu0 %v2868_v13 }
 0x76c   : > { %1848 = vmatmul.msk.f32.vlgmr.msra.gmra.mxu0 %vm230_vm2, %v3107_v14 }
 0x76d   : > { %1467 = vmatpush.msrb.mxu0 %v2877_v16 }
 0x76f   : > { %1468 = vmatpush.msrb.mxu0 %v2883_v17 }
 0x771   : > { %1469 = vmatpush.msrb.mxu0 %v2889_v44 }
 0x773   : > { %1470 = vmatpush.msrb.mxu0 %v2895_v20 }
 0x775   : > { %1588 = vmatpush.msra.mxu0 %v1970_v22 }
 0x777   : > { %1589 = vmatpush.msra.mxu0 %v1971_v23 }
 0x779   : > { %1590 = vmatpush.msra.mxu0 %v1972_v27 }
 0x77b   : > { %1591 = vmatpush.msra.mxu0 %v1973_v30  ;;  %v813_v30 = vadd.f32 %v2821_v12, %v2710_v26 }
 0x77d   : > { %1592 = vmatpush.msra.mxu0 %v1974_v32 }
 0x77f   : > { %1593 = vmatpush.msra.mxu0 %v1975_v34  ;;  %v815_v34 = vadd.f32 %v813_v30, %v2653_v9  ;;  %v2068_v30 = vmov 0  }
 0x780   : > { %1898 = vset.pattern.permute.xlu2 %v2068_v30  ;;  %1899 = vset.pattern.permute.xlu0 %v2068_v30 }
 0x781   : > { %1594 = vmatpush.msra.mxu0 %v1976_v54  ;;  %v816_v54 = vmax.f32 %v815_v34, 0.0 }
 0x783   : > { %1595 = vmatpush.msra.mxu0 %v1977_v47 }
 0x789   : > { %v1333_v8 = vpop.permute.xlu2 %1332 }
 0x7ac   : > { %v1302_v39 = vpop.f32.mrf.mxu2 }
 0x7e1   : > { %v1234_v40 = vpop.f32.mrf.mxu0 }
 0x7e2   : > { %1845 = vmatmul.msk.f32.vlgmr.msrb.gmra.mxu1 %vm230_vm2, %v1234_v40 }
 0x7e3   : > { %1438 = vmatpush.msrb.mxu1 %v2926_v53 }
 0x7e5   : > { %1439 = vmatpush.msrb.mxu1 %v2932_v19 }
 0x7e7   : > { %1440 = vmatpush.msrb.mxu1 %v2938_v38 }
 0x7e9   : > { %v1322_v42 = vpop.f32.mrf.mxu0  ;;  %1441 = vmatpush.msrb.mxu1 %v2944_v49 }
 0x7ea   : > { %v1323_v18 = vadd.f32 %v1322_v42, %v1302_v39  ;;  %1849 = vmatmul.msk.f32.vlgmr.msra.gmra.mxu1 %vm302_vm0, %v1333_v8  ;;  %v817_v8 = vmul.f32 %v816_v54, %v2657_v52 }
 0x7eb   : > { %1442 = vmatpush.msrb.mxu1 %v2951_v50 }
 0x7ec   : > { %v1325_v45 = vadd.f32 %v1323_v18, %v2653_v9  ;;  %v818_v18 = vsel %vm473_vm9, %v817_v8, 0.0 }
 0x7ed   : > { %1443 = vmatpush.msrb.mxu1 %v2958_v55 }
 0x7ee   : > { %v1326_v28 = vmax.f32 %v1325_v45, 0.0 }
 0x7ef   : > { %1444 = vmatpush.msrb.mxu1 %v2964_v31 }
 0x7f0   : > { %v1327_v33 = vmul.f32 %v1326_v28, %v2657_v52 }
 0x7f1   : > { %1445 = vmatpush.msrb.mxu1 %v2971_v37 }
 0x7f2   : > { %1853 = vmatmul.msk.f32.vlgmr.msrb.gmra.mxu1 %vm230_vm2, %v1234_v40  ;;  %v1328_v48 = vsel %vm473_vm9, %v1327_v33, 0.0 }
 0x7f3   : > { %1329 = vadd.xlane.f32.xlu2 %v1328_v48  ;;  %1565 = vmatpush.msra.mxu1 %v2768_v2  ;;  %v1987_v2 = vld [vmem:[%s3092_s1 + $0x190] sm:$0xff] }
 0x7f5   : > { %1566 = vmatpush.msra.mxu1 %v2774_v3  ;;  %v1988_v3 = vld [vmem:[%s3092_s1 + $0x188] sm:$0xff] }
 0x7f7   : > { %1567 = vmatpush.msra.mxu1 %v2780_v4  ;;  %v1989_v4 = vld [vmem:[%s3092_s1 + $0x180] sm:$0xff] }
 0x7f9   : > { %1568 = vmatpush.msra.mxu1 %v2786_v5  ;;  %v1990_v5 = vld [vmem:[%s3092_s1 + $0x178] sm:$0xff] }
 0x7fb   : > { %1569 = vmatpush.msra.mxu1 %v2792_v6  ;;  %v1991_v6 = vld [vmem:[%s3092_s1 + $0x170] sm:$0xff] }
 0x7fd   : > { %1570 = vmatpush.msra.mxu1 %v2798_v7  ;;  %v1992_v7 = vld [vmem:[%s3092_s1 + $0x168] sm:$0xff] }
 0x7ff   : > { %1571 = vmatpush.msra.mxu1 %v2804_v10  ;;  %v1993_v10 = vld [vmem:[%s3092_s1 + $0x160] sm:$0xff] }
 0x801   : > { %1572 = vmatpush.msra.mxu1 %v2810_v11  ;;  %v1277_v11 = vpop.f32.mrf.mxu3 }
 0x803   : > { %1653 = vmatpush.msrb.mxu1 %v1986_v51 }
 0x805   : > { %1654 = vmatpush.msrb.mxu1 %v1987_v2 }
 0x807   : > { %1655 = vmatpush.msrb.mxu1 %v1988_v3 }
 0x809   : > { %1656 = vmatpush.msrb.mxu1 %v1989_v4 }
 0x80b   : > { %1657 = vmatpush.msrb.mxu1 %v1990_v5 }
 0x80d   : > { %1658 = vmatpush.msrb.mxu1 %v1991_v6 }
 0x80f   : > { %1659 = vmatpush.msrb.mxu1 %v1992_v7 }
 0x811   : > { %1660 = vmatpush.msrb.mxu1 %v1993_v10 }
 0x85f   : > { %v1257_v25 = vpop.f32.mrf.mxu1 }
 0x860   : > { %v1278_v46 = vadd.f32 %v1277_v11, %v1257_v25 }
 0x862   : > { %v1280_v41 = vadd.f32 %v1278_v46, %v2515_v43 }
 0x864   : > { %v1281_v15 = vmax.f32 %v1280_v41, 0.0 }
 0x866   : > { %1724 = vst.msk [vmem:[#allocation4 + $0x5] sm:$0x1] %vm473_vm9, %v1281_v15  ;;  %1854 = vmatmul.msk.f32.vlgmr.msrb.gmra.mxu0 %vm230_vm2, %v1281_v15 }
 0x867   : > { %v1355_v58 = vpop.f32.mrf.mxu1 }
 0x868   : > { %v1356_v56 = vadd.f32 %v1355_v58, %v1334_v57 }
 0x86a   : > { %v1358_v59 = vmax.f32 %v1356_v56, 0.0 }
 0x86c   : > { %v1359_v61 = vadd.f32 1e-06, %v1358_v59  ;;  %1502 = vrot.lane.b32.xlu0 %v1358_v59, %s2067_s27 }
 0x86e   : > { %1936 = vlog2.f32 %v1359_v61 }
 0x874   : > { %v1937_v62 = vpop.eup %1936 }
 0x875   : > { %v1361_v63 = vmul.f32 0.6931472, %v1937_v62 }
 0x877   : > { %v1362_v14 = vmul.f32 -0.98, %v1361_v63 }
 0x879   : > { %v1363_v22 = vmul.f32 1.442695, %v1362_v14 }
 0x87b   : > { %1938 = vpow2.f32 %v1363_v22 }
 0x881   : > { %v1939_v43 = vpop.eup %1938 }
 0x882   : > { %v1366_v23 = vrot.slane %v1939_v43, 2 }
 0x884   : > { %v1368_v27 = vmul.f32 %v1366_v23, %v2185_v24 }
 0x886   : > { %v1369_v32 = vadd.f32 2.0, %v1368_v27 }
 0x888   : > { %1940 = vrsqrt.f32 %v1369_v32  ;;  %vm1377_vm1 = vcmp.eq.f32.partialorder %v1369_v32, inf  ;;  %v1380_v48 = vand.u32 2147483648, %v1369_v32  ;;  %vm1379_vm3 = vcmp.eq.f32.partialorder %v1369_v32, 0.0 }
 0x88e   : > { %v1941_v47 = vpop.eup %1940 }
 0x88f   : > { %v1371_v40 = vmul.f32 %v1941_v47, %v1369_v32 }
 0x891   : > { %v1372_v39 = vmul.f32 %v1941_v47, %v1371_v40 }
 0x893   : > { %v1373_v42 = vmul.f32 0.5, %v1372_v39 }
 0x895   : > { %v1374_v45 = vsub.f32 1.5, %v1373_v42  ;;  %v650_v42 = vpop.xlane.xlu2 %649 }
 0x896   : > { %819 = vadd.xlane.f32.xlu0 %v818_v18 }
 0x897   : > { %v1375_v28 = vmul.f32 %v1941_v47, %v1374_v45  ;;  %v476_v45 = vpop.xlane.xlu1 %475 }
 0x899   : > { %v1376_v33 = vmul.f32 %v1375_v28, %v1369_v32 }
 0x89b   : > { %v1378_v26 = vsel %vm1377_vm1, %v1369_v32, %v1376_v33  ;;  %v1672_v33 = vsel %vm1671_vm6, %v476_v45, %v650_v42 }
 0x89c   : > { %v1381_v12 = vsel %vm1379_vm3, %v1380_v48, %v1378_v26 }
 0x89d   : > { %v1850_v51 = vadd.f32 -1.4142135, %v1381_v12  ;;  %v990_v18 = vpop.xlane.xlu2 %989 }
 0x89f   : > { %v1384_v2 = vrot.slane %v1850_v51, 6  ;;  %v1160_v26 = vpop.xlane.xlu1 %1159 }
 0x8a1   : > { %1851 = vmatmul.msk.f32.vlgmr.msrb.gmra.mxu3 %vm230_vm2, %v1384_v2 }
 0x8a2   : > { %1633 = vmatpush.msrb.mxu3 %v2850_v1 }
 0x8a4   : > { %1634 = vmatpush.msrb.mxu3 %v2856_v60 }
 0x8a5   : > { %v1330_v28 = vpop.xlane.xlu2 %1329 }
 0x8a6   : > { %1635 = vmatpush.msrb.mxu3 %v2862_v0 }
 0x8a8   : > { %1636 = vmatpush.msrb.mxu3 %v2868_v13 }
 0x8a9   : > { %1855 = vmatmul.msk.f32.vlgmr.msra.gmra.mxu3 %vm230_vm2, %v941_v36 }
 0x8aa   : > { %1637 = vmatpush.msrb.mxu3 %v2877_v16 }
 0x8ac   : > { %1638 = vmatpush.msrb.mxu3 %v2883_v17 }
 0x8ae   : > { %1639 = vmatpush.msrb.mxu3 %v2889_v44  ;;  %v1447_v44 = vpop.f32.mrf.mxu1 }
 0x8b0   : > { %1640 = vmatpush.msrb.mxu3 %v2895_v20 }
 0x8de   : > { %v1503_v35 = vpop.permute.xlu0 %1502 }
 0x8e3   : > { %v1472_v36 = vpop.f32.mrf.mxu0 }
 0x924   : > { %v1404_v3 = vpop.f32.mrf.mxu3 }
 0x925   : > { %1721 = vst.msk [vmem:[#allocation4 + $0x2] sm:$0x1] %vm473_vm9, %v1404_v3  ;;  %1852 = vmatmul.msk.f32.vlgmr.msra.gmra.mxu2 %vm230_vm2, %v1404_v3 }
 0x926   : > { %1608 = vmatpush.msra.mxu2 %v2926_v53 }
 0x928   : > { %1609 = vmatpush.msra.mxu2 %v2932_v19  ;;  %v3049_v19 = vld [vmem:[%s3092_s1 + $0x1e0] sm:$0xff] }
 0x929   : > { %1686 = vperm.xlu2 %1898, %v3049_v19  }
 0x92a   : > { %1610 = vmatpush.msra.mxu2 %v2938_v38 }
 0x92c   : > { %v1492_v1 = vpop.f32.mrf.mxu3  ;;  %1611 = vmatpush.msra.mxu2 %v2944_v49 }
 0x92d   : > { %v1493_v60 = vadd.f32 %v1492_v1, %v1472_v36  ;;  %1856 = vmatmul.msk.f32.vlgmr.msrb.gmra.mxu2 %vm302_vm0, %v1503_v35 }
 0x92e   : > { %1612 = vmatpush.msra.mxu2 %v2951_v50  ;;  %v1504_v50 = vrot.slane %v2205_v29, 7 }
 0x92f   : > { %v1495_v0 = vadd.f32 %v1493_v60, %v2653_v9 }
 0x930   : > { %1613 = vmatpush.msra.mxu2 %v2958_v55 }
 0x931   : > { %v1496_v13 = vmax.f32 %v1495_v0, 0.0 }
 0x932   : > { %1614 = vmatpush.msra.mxu2 %v2964_v31 }
 0x933   : > { %v1497_v16 = vmul.f32 %v1496_v13, %v2657_v52 }
 0x934   : > { %1615 = vmatpush.msra.mxu2 %v2971_v37 }
 0x935   : > { %1860 = vmatmul.msk.f32.vlgmr.msra.gmra.mxu2 %vm230_vm2, %v1404_v3  ;;  %v1498_v17 = vsel %vm473_vm9, %v1497_v16, 0.0 }
 0x936   : > { %1499 = vadd.xlane.f32.xlu0 %v1498_v17 }
 0x9a8   : > { %v1427_v20 = vpop.f32.mrf.mxu2 }
 0x9a9   : > { %v1448_v53 = vadd.f32 %v1447_v44, %v1427_v20 }
 0x9ab   : > { %v1450_v38 = vadd.f32 %v3049_v19, %v1448_v53 }
 0x9ad   : > { %v1451_v49 = vmax.f32 %v1450_v38, 0.0 }
 0x9af   : > { %1723 = vst.msk [vmem:[#allocation4 + $0x4] sm:$0x1] %vm473_vm9, %v1451_v49  ;;  %1861 = vmatmul.msk.f32.vlgmr.msrb.gmra.mxu3 %vm230_vm2, %v1451_v49 }
 0x9b0   : > { %v1525_v55 = vpop.f32.mrf.mxu2 }
 0x9b1   : > { %v1526_v31 = vadd.f32 %v1525_v55, %v1504_v50 }
 0x9b3   : > { %v1528_v37 = vmax.f32 %v1526_v31, 0.0 }
 0x9b5   : > { %v1529_v4 = vadd.f32 1e-06, %v1528_v37  ;;  %1715 = vrot.lane.b32.xlu0 %v1528_v37, %s2067_s27  ;;  %s2069_s27 = smov [#allocation4]  }
 0x9b6   : > { %s1744_s24 = sshll.u32 %s2069_s27, 4  ;;  %s1745_s24 = int_to_ptr.vmem [resolvable:$true] %s1744_s24 }
 0x9b7   : > { %1942 = vlog2.f32 %v1529_v4 }
 0x9bd   : > { %v1943_v5 = vpop.eup %1942 }
 0x9be   : > { %v1531_v6 = vmul.f32 0.6931472, %v1943_v5 }
 0x9c0   : > { %v1532_v7 = vmul.f32 -0.98, %v1531_v6 }
 0x9c2   : > { %v1533_v10 = vmul.f32 1.442695, %v1532_v7 }
 0x9c4   : > { %1944 = vpow2.f32 %v1533_v10 }
 0x9ca   : > { %v1945_v11 = vpop.eup %1944 }
 0x9cb   : > { %v1536_v25 = vrot.slane %v1945_v11, 1 }
 0x9cd   : > { %v1538_v46 = vmul.f32 %v1536_v25, %v2185_v24  ;;  %v820_v24 = vpop.xlane.xlu0 %819 }
 0x9ce   : > { %v1674_v48 = vsel %vm1673_vm7, %v1672_v33, %v820_v24 }
 0x9cf   : > { %v1539_v41 = vadd.f32 2.0, %v1538_v46  ;;  %v1676_v12 = vsel %vm1675_vm8, %v1674_v48, %v990_v18 }
 0x9d1   : > { %1946 = vrsqrt.f32 %v1539_v41  ;;  %vm1547_vm0 = vcmp.eq.f32.partialorder %v1539_v41, inf  ;;  %v1550_v62 = vand.u32 2147483648, %v1539_v41  ;;  %vm1549_vm4 = vcmp.eq.f32.partialorder %v1539_v41, 0.0 }
 0x9d5   : > { %v1500_v23 = vpop.xlane.xlu0 %1499 }
 0x9d7   : > { %v1947_v15 = vpop.eup %1946 }
 0x9d8   : > { %v1541_v29 = vmul.f32 %v1947_v15, %v1539_v41 }
 0x9da   : > { %v1542_v57 = vmul.f32 %v1947_v15, %v1541_v29 }
 0x9dc   : > { %v1543_v58 = vmul.f32 0.5, %v1542_v57 }
 0x9de   : > { %v1544_v56 = vsub.f32 1.5, %v1543_v58 }
 0x9e0   : > { %v1545_v59 = vmul.f32 %v1947_v15, %v1544_v56 }
 0x9e2   : > { %v1546_v61 = vmul.f32 %v1545_v59, %v1539_v41 }
 0x9e4   : > { %v1548_v63 = vsel %vm1547_vm0, %v1539_v41, %v1546_v61 }
 0x9e5   : > { %v1551_v14 = vsel %vm1549_vm4, %v1550_v62, %v1548_v63 }
 0x9e6   : > { %v1857_v22 = vadd.f32 -1.4142135, %v1551_v14 }
 0x9e8   : > { %v1554_v43 = vrot.slane %v1857_v22, 7 }
 0x9ea   : > { %1858 = vmatmul.msk.f32.vlgmr.msra.gmra.mxu1 %vm230_vm2, %v1554_v43 }
 0x9f2   : > { %1862 = vmatmul.msk.f32.vlgmr.msrb.gmra.mxu1 %vm230_vm2, %v2824_v21 }
 0xa27   : > { %v1716_v27 = vpop.permute.xlu0 %1715 }
 0xa28   : > { %1719 = vst.msk [vmem:[#allocation4] sm:$0x1] %vm1718_vm5, %v1716_v27 }
 0xa32   : > { %v1642_v34 = vpop.f32.mrf.mxu3 }
 0xa67   : > { %v1574_v32 = vpop.f32.mrf.mxu1 }
 0xa68   : > { %1720 = vst.msk [vmem:[#allocation4 + $0x1] sm:$0x1] %vm473_vm9, %v1574_v32  ;;  %1859 = vmatmul.msk.f32.vlgmr.msra.gmra.mxu0 %vm230_vm2, %v1574_v32  ;;  %vm1677_vm2 = vcmask 31744  }
 0xa69   : > { %v1678_v3 = vsel %vm1677_vm2, %v1676_v12, %v1160_v26 }
 0xa6a   : > { %v1680_v60 = vsel %vm1679_vm10, %v1678_v3, %v1330_v28 }
 0xa6b   : > { %v1682_v0 = vsel %vm1681_vm11, %v1680_v60, %v1500_v23 }
 0xa6f   : > { %v1662_v54 = vpop.f32.mrf.mxu1 }
 0xa70   : > { %v1663_v47 = vadd.f32 %v1662_v54, %v1642_v34 }
 0xa72   : > { %v1665_v21 = vadd.f32 %v1663_v47, %v2653_v9  ;;  %v1617_v9 = vpop.f32.mrf.mxu2 }
 0xa74   : > { %v1666_v40 = vmax.f32 %v1665_v21, 0.0 }
 0xa76   : > { %v1667_v8 = vmul.f32 %v1666_v40, %v2657_v52  ;;  %v1687_v52 = vpop.permute.xlu2 %1686 }
 0xa77   : > { %v1688_v1 = vrot.slane %v1687_v52, 3 }
 0xa78   : > { %v1668_v39 = vsel %vm473_vm9, %v1667_v8, 0.0 }
 0xa79   : > { %1669 = vadd.xlane.f32.xlu1 %v1668_v39 }
 0xae5   : > { %v1597_v51 = vpop.f32.mrf.mxu0 }
 0xae6   : > { %v1618_v2 = vadd.f32 %v1617_v9, %v1597_v51 }
 0xae8   : > { %v1620_v35 = vadd.f32 %v3049_v19, %v1618_v2 }
 0xaea   : > { %v1621_v36 = vmax.f32 %v1620_v35, 0.0 }
 0xaec   : > { %1722 = vst.msk [vmem:[#allocation4 + $0x3] sm:$0x1] %vm473_vm9, %v1621_v36  ;;  %v1670_v13 = vpop.xlane.xlu1 %1669 }
 0xaed   : > { %v1684_v16 = vsel %vm1683_vm12, %v1682_v0, %v1670_v13  ;;  %1877 = dma.vmem_to_hbm [thread:$0]  (%p1882_p5), %s1745_s24, 128, %s1747_s28, [#allocation5]  }
 0xaee   : > { %v1690_v17 = vadd.f32 %v1688_v1, %v1684_v16 }
 0xaf0   : > { %v1863_v44 = vmul.f32 -1.442695, %v1690_v17 }
 0xaf2   : > { %1948 = vpow2.f32 %v1863_v44 }
 0xaf8   : > { %v1949_v20 = vpop.eup %1948 }
 0xaf9   : > { %v1694_v53 = vadd.f32 1.0, %v1949_v20 }
 0xafb   : > { %1950 = vrcp.f32 %v1694_v53  ;;  %v1706_v50 = vand.u32 2147483648, %v1694_v53  ;;  %v1704_v31 = vand.u32 2147483647, %v1694_v53  ;;  %vm1700_vm9 = vweird.f32 %v1694_v53 }
 0xafd   : > { %v1707_v4 = vor.u32 1.1754944e-38, %v1706_v50  ;;  %vm1705_vm1 = vcmp.eq.f32.partialorder %v1704_v31, 8.507059e+37 }
 0xb01   : > { %v1951_v19 = vpop.eup %1950 }
 0xb02   : > { %v1696_v38 = vmul.f32 %v1951_v19, %v1694_v53  ;;  %vm1701_vm13 = vweird.f32 %v1951_v19 }
 0xb03   : > { %vm1702_vm14 = vmor %vm1700_vm9, %vm1701_vm13 }
 0xb04   : > { %v1697_v49 = vsub.f32 1.0, %v1696_v38 }
 0xb06   : > { %v1698_v55 = vmul.f32 %v1951_v19, %v1697_v49 }
 0xb08   : > { %v1699_v37 = vadd.f32 %v1951_v19, %v1698_v55 }
 0xb0a   : > { %v1703_v5 = vsel %vm1702_vm14, %v1951_v19, %v1699_v37 }
 0xb0b   : > { %v1708_v6 = vsel %vm1705_vm1, %v1707_v4, %v1703_v5 }
 0xb0c   : > { %v1711_v7 = vsel %vm1710_vm15, %v1708_v6, 0.0 }
 0xb0d   : > { %1873 = vst [vmem:[%s1871_s8 - $0x1] sm:$0x1] %v1711_v7 }
 0xb0e   : > { %1875 = dma.vmem_to_hbm [thread:$0]  (%p1882_p5), %s1733_s30, 64, %s1735_s7, [#allocation3]  }
 0xb0f   : > { %2056 = dma.done.wait (%p1882_p5), [#allocation3], 64  }
 0xb10   : > { %2058 = vsyncadd (%p1882_p5), [#allocation3], 4294967232 }
 0xb11   : > { %2060 = dma.done.wait (%p1882_p5), [#allocation5], 128  }
 0xb12   : > { %2062 = vsyncadd (%p1882_p5), [#allocation5], 4294967168 }
 0xb13 PF: > { %s17_s15 = sadd.s32 1, %s2065_s15  }
 0xb14   : > { %p14_p6 = scmp.ge.s32.totalorder %s17_s15, 6  }
 0xb16   :  { %16 = sbr.rel (!%p14_p6) target bundleno = 2 (0x2), region = 72 }
 0xb1b   :  { %1765 = vsyncpa [#allocation3], 1 }
 0xb1c   :  { %1767 = vsyncpa [#allocation3 + $0x1], 1 }
 0xb1d   :  { %1768 = vsyncpa [#allocation5], 1 }

</bundles_post_ra>
